<compile_context>
chip_gen: v7x
topology: tpu7x:2x2x1
jax: 0.10.0
libtpu: 0.0.40
codegen_flags: <defaults>
</compile_context>

<pallas_src>
import functools

import jax
import jax.numpy as jnp
from jax import lax
from jax.experimental import pallas as pl
from jax.experimental.pallas import tpu as pltpu


def _round_up(a, m):
    return (a + m - 1) // m * m


def _vmem_budget_bytes():
    """Per-core VMEM working-set budget used to pick the batch-chunk size."""
    try:
        info = pltpu.get_tpu_info()
        cap = int(getattr(info, "vmem_capacity_bytes"))
        if cap > 0:
            return cap // 3          # headroom for double-buffering / compiler
    except Exception:
        pass
    return 20 * 1024 * 1024          # conservative: fits v7x's 64 MiB per TC


# ----------------------------------------------------------------------------
# Fused Pallas kernel: 4x (im2col GEMM with folded bias + activation)
# ----------------------------------------------------------------------------
def _decoder_kernel(x_ref, m2_ref, m3_ref, w_ref, o_ref, a_ref, col_ref, *,
                    layer_offs, sl, nbp, tmax):
    """Refs (per grid step / chunk):

    x_ref  : (8, La)        zero-ringed input canvas (channels on sublanes)
    mN_ref : (1, nbp)       0/1 interior masks (recreate the pad=1 zero ring)
    w_ref  : (4, 8, R)      per-layer lane-dense weight slabs, bias folded in
    o_ref  : (1, nbp)       sigmoid(conv4) canvas (interior = answer)
    a_ref  : (8, La)        activation scratch, same lane frame as x_ref
    col_ref: (R, nbp)       im2col scratch, R = 8*(T+1), row 8*T = ones (bias)
    """
    r = col_ref.shape[0]
    ones_row = 8 * tmax
    rows_l1 = 8 * len(layer_offs[0])

    # Slack lanes and sublane rows layer 1 never writes must hold real zeros:
    # stale VMEM could be NaN and 0 * NaN = NaN would leak through the masked
    # padding ring.
    a_ref[...] = jnp.zeros_like(a_ref)
    col_ref[rows_l1:, :] = jnp.zeros((r - rows_l1, nbp), jnp.float32)
    # Bias folded into the GEMM via a constant ones row (written once).
    col_ref[ones_row:ones_row + 1, :] = jnp.ones((1, nbp), jnp.float32)

    def conv_gemm(src_ref, layer_idx):
        # im2col: tap t / input channel c -> sublane 8*t + c of the col slab.
        # The lane shift happens on the Ref load path (static slice starts).
        for t, off in enumerate(layer_offs[layer_idx]):
            col_ref[8 * t:8 * (t + 1), :] = src_ref[:, sl + off:sl + off + nbp]
        # One fused MXU GEMM per layer: (8, R) x (R, nbp); bias included via
        # the ones row; unused tap/pad columns of the weight are zero.
        return jnp.dot(w_ref[layer_idx], col_ref[...],
                       preferred_element_type=jnp.float32)

    a_ref[:, sl:sl + nbp] = jnp.maximum(conv_gemm(x_ref, 0), 0.0)            # conv1+relu
    a_ref[:, sl:sl + nbp] = jnp.maximum(conv_gemm(a_ref, 1), 0.0) * m2_ref[...]  # conv2+relu, ring->0
    a_ref[:, sl:sl + nbp] = jnp.maximum(conv_gemm(a_ref, 2), 0.0) * m3_ref[...]  # conv3+relu, ring->0
    o_ref[...] = jax.nn.sigmoid(conv_gemm(a_ref, 3)[:1, :])                  # conv4+sigmoid (row 0)


# ----------------------------------------------------------------------------
# One-time parameter prep (hoisted out of the forward path)
# ----------------------------------------------------------------------------
def prepare_decoder_params(params):
    """Pack PyTorch-layout conv params into one lane-dense (4, 8, R) slab.

    Layout per layer (R = 8*(T+1), T = max kernel_size**2):
        W[cout, 8*t + cin] = w[cout, cin, ki, kj]   with t = ki*k + kj
        W[cout, 8*T]       = bias[cout]             (matches the ones row)
    Rows cout..7 stay zero; the final sigmoid only reads row 0 of conv4 and
    relies on this zero padding.
    """
    ks = [int(params[f"w{i}"].shape[2]) for i in (1, 2, 3, 4)]
    assert ks[0] == ks[1] and ks[2] == ks[3]
    tmax = max(k * k for k in ks)
    r = 8 * (tmax + 1)
    packed = []
    for i in (1, 2, 3, 4):
        w = params[f"w{i}"].astype(jnp.float32)
        b = params[f"b{i}"].astype(jnp.float32)
        cout, cin, k, _ = w.shape
        assert cout <= 8 and cin <= 8, "channel count must be <= 8 (z_dim <= 7)"
        wt = jnp.transpose(w.reshape(cout, cin, k * k), (0, 2, 1))     # (cout,k*k,cin)
        wt = jnp.pad(wt, ((0, 0), (0, 0), (0, 8 - cin))).reshape(cout, k * k * 8)
        slab = jnp.zeros((8, r), jnp.float32)
        slab = slab.at[:cout, :k * k * 8].set(wt)
        slab = slab.at[:cout, 8 * tmax].set(b)
        packed.append(slab)
    return jnp.stack(packed), ks[0], ks[2]


# ----------------------------------------------------------------------------
# Decoder forward (NCHW in / NCHW out, like the PyTorch module)
# ----------------------------------------------------------------------------
def decoder_forward(x, w_packed, *, klow, khigh):
    """x: (B, 1+z_dim, H, W).  Returns (B, 1, H_out, W_out)."""
    bsz, c0, h, w = x.shape
    r = int(w_packed.shape[-1])
    tmax = r // 8 - 1
    assert c0 <= 8 and klow * klow <= tmax and khigh * khigh <= tmax
    sh, sw = h + 2, w + 2                     # zero-ringed canvas

    # Spatial extents through the network (stride=1; pads 0,0,1,1).
    h1, w1 = h - klow + 1, w - klow + 1
    h2, w2 = h1 - klow + 1, w1 - klow + 1
    h3, w3 = h2 + 3 - khigh, w2 + 3 - khigh
    h4, w4 = h3 + 3 - khigh, w3 + 3 - khigh
    assert h4 >= 1 and w4 >= 1
    # Every layer's valid region must fit inside the canvas interior.
    assert h3 <= h and w3 <= w and h2 <= h and w2 <= w

    # Kernel-tap lane offsets on the flattened (sh, sw) canvas.
    offs_low = tuple(ki * sw + kj for ki in range(klow) for kj in range(klow))
    offs_high = tuple((ki - 1) * sw + (kj - 1)
                      for ki in range(khigh) for kj in range(khigh))
    layer_offs = (offs_low, offs_low, offs_high, offs_high)
    min_off = min(min(o) for o in layer_offs)
    max_off = max(max(o) for o in layer_offs)

    def plan(bb):
        nb = bb * sh * sw                                   # valid lane window
        nbp = _round_up(nb, 128)                            # lane-dense output
        sl = _round_up(max(0, -min_off), 128)               # aligned left slack
        la = _round_up(sl + nbp + max(0, max_off), 128)     # activation length
        vmem = 4 * (3 * 8 * la          # canvas block (x2 dbl-buffer) + a_ref
                    + r * nbp           # im2col scratch
                    + 4 * nbp           # output block (x2) + two masks
                    + 4 * 8 * r)        # packed weights
        return nb, nbp, sl, la, vmem

    # Batch-chunk size from the VMEM budget (v7x has 64 MiB/TC, v5e/v6e 128).
    budget = _vmem_budget_bytes()
    bb = 1
    for cand in sorted((d for d in range(1, bsz + 1) if bsz % d == 0),
                       reverse=True):
        if plan(cand)[4] <= budget:
            bb = cand
            break
    nb, nbp, sl, la, vmem_need = plan(bb)
    nchunks = bsz // bb

    # Input canvases: (nchunks, 8, la); image b sits at (1,1) of its own
    # zero-ringed (sh, sw) canvas; a chunk's canvases are lane-concatenated.
    # TODO(synk): for large B fold this NCHW->canvas transpose into the kernel
    # (per-image DMA) to avoid the extra HBM round trip of the input.
    xc = x.astype(jnp.float32).reshape(nchunks, bb, c0, h, w)
    xc = jnp.transpose(xc, (0, 2, 1, 3, 4))
    xc = jnp.pad(xc, ((0, 0), (0, 8 - c0), (0, 0), (1, 1), (1, 1)))
    canvas = jnp.pad(xc.reshape(nchunks, 8, nb),
                     ((0, 0), (0, 0), (sl, la - sl - nb)))

    def interior_mask(hh, ww):
        m = jnp.zeros((sh, sw), jnp.float32).at[1:1 + hh, 1:1 + ww].set(1.0)
        return jnp.pad(jnp.tile(m.reshape(-1), bb), (0, nbp - nb)).reshape(1, nbp)

    mask2 = interior_mask(h2, w2)     # valid region after conv2 = conv3's pad
    mask3 = interior_mask(h3, w3)     # valid region after conv3 = conv4's pad

    vmem_limit = int(min(64 * 1024 * 1024, max(32 * 1024 * 1024, 2 * vmem_need)))

    out = pl.pallas_call(
        functools.partial(_decoder_kernel, layer_offs=layer_offs, sl=sl,
                          nbp=nbp, tmax=tmax),
        out_shape=jax.ShapeDtypeStruct((nchunks, 1, nbp), jnp.float32),
        grid=(nchunks,),
        in_specs=[
            pl.BlockSpec((None, 8, la), lambda i: (i, 0, 0)),   # canvas chunk
            pl.BlockSpec((1, nbp), lambda i: (0, 0)),           # mask2 (shared)
            pl.BlockSpec((1, nbp), lambda i: (0, 0)),           # mask3 (shared)
            pl.BlockSpec((4, 8, r), lambda i: (0, 0, 0)),       # weights (shared)
        ],
        out_specs=pl.BlockSpec((None, 1, nbp), lambda i: (i, 0, 0)),
        scratch_shapes=[pltpu.VMEM((8, la), jnp.float32),       # activation
                        pltpu.VMEM((r, nbp), jnp.float32)],     # im2col
        compiler_params=pltpu.CompilerParams(
            dimension_semantics=("parallel",),
            vmem_limit_bytes=vmem_limit),
    )(canvas, mask2, mask3, w_packed)

    out = out[:, 0, :nb].reshape(bsz, sh, sw)[:, 1:1 + h4, 1:1 + w4]
    return out[:, None, :, :]                    # NCHW (B, 1, H_out, W_out)


# ----------------------------------------------------------------------------
# Deterministic synthetic init matching nn.Conv2d parameter shapes
# ----------------------------------------------------------------------------
def init_decoder_params(key, kernel_size_high, kernel_size_low, z_dim):
    ks = jax.random.split(key, 8)

    def conv_init(kw_key, kb_key, cout, cin, k):
        bound = 1.0 / (cin * k * k) ** 0.5
        w = jax.random.uniform(kw_key, (cout, cin, k, k), jnp.float32, -bound, bound)
        b = jax.random.uniform(kb_key, (cout,), jnp.float32, -bound, bound)
        return w, b

    w1, b1 = conv_init(ks[0], ks[1], z_dim, 1 + z_dim, kernel_size_low)
    w2, b2 = conv_init(ks[2], ks[3], z_dim, z_dim, kernel_size_low)
    w3, b3 = conv_init(ks[4], ks[5], z_dim, z_dim, kernel_size_high)
    w4, b4 = conv_init(ks[6], ks[7], 1, z_dim, kernel_size_high)
    return dict(w1=w1, b1=b1, w2=w2, b2=b2, w3=w3, b3=b3, w4=w4, b4=b4)


# ----------------------------------------------------------------------------
# Pure-JAX reference (lax.conv) for a correctness sanity check
# ----------------------------------------------------------------------------
def _ref_conv(x, w, b, pad):
    out = lax.conv_general_dilated(
        x, w, window_strides=(1, 1),
        padding=((pad, pad), (pad, pad)),
        dimension_numbers=("NCHW", "OIHW", "NCHW"),
        precision=lax.Precision.HIGHEST)
    return out + b.reshape(1, -1, 1, 1)


def decoder_forward_ref(x, p):
    x = jax.nn.relu(_ref_conv(x, p["w1"], p["b1"], 0))
    x = jax.nn.relu(_ref_conv(x, p["w2"], p["b2"], 0))
    x = jax.nn.relu(_ref_conv(x, p["w3"], p["b3"], 1))
    x = _ref_conv(x, p["w4"], p["b4"], 1)
    return jax.nn.sigmoid(x)


if __name__ == "__main__":
    configs = [
        dict(z_dim=4, klow=3, khigh=3, B=2, H=16, W=16),   # primary (spec) shape
        dict(z_dim=3, klow=2, khigh=3, B=3, H=11, W=13),   # rectangular, klow != khigh
        dict(z_dim=4, klow=3, khigh=5, B=4, H=20, W=12),   # larger pad-conv kernel
    ]

    key = jax.random.PRNGKey(0)
    fwd = jax.jit(decoder_forward, static_argnames=("klow", "khigh"))

    for cfg in configs:
        key, kx, kp = jax.random.split(key, 3)
        x = jax.random.normal(
            kx, (cfg["B"], 1 + cfg["z_dim"], cfg["H"], cfg["W"]), jnp.float32)
        params = init_decoder_params(kp, cfg["khigh"], cfg["klow"], cfg["z_dim"])

        w_packed, klow, khigh = prepare_decoder_params(params)  # one-time prep
        assert (klow, khigh) == (cfg["klow"], cfg["khigh"])

        out = jax.block_until_ready(fwd(x, w_packed, klow=klow, khigh=khigh))
        ref = decoder_forward_ref(x, params)

        assert out.shape == ref.shape, (cfg, out.shape, ref.shape)
        err = float(jnp.max(jnp.abs(out - ref)))
        assert err < 1e-4, (cfg, err)

    print("KERNEL_OK")
</pallas_src>

<mosaic_0001>
module attributes {stable_mosaic.version = 11 : i64} {
  func.func @_decoder_kernel(%arg0: i32, %arg1: memref<1x8x1024xf32, #tpu.memory_space<vmem>>, %arg2: memref<1x768xf32, #tpu.memory_space<vmem>>, %arg3: memref<1x768xf32, #tpu.memory_space<vmem>>, %arg4: memref<4x8x80xf32, #tpu.memory_space<vmem>>, %arg5: memref<1x1x768xf32, #tpu.memory_space<vmem>>, %arg6: memref<8x1024xf32, #tpu.memory_space<vmem>>, %arg7: memref<80x768xf32, #tpu.memory_space<vmem>>) attributes {dimension_semantics = [#tpu.dimension_semantics<parallel>], iteration_bounds = array<i64: 1>, scalar_prefetch = 0 : i64, scratch_operands = 2 : i64, tpu.core_type = #tpu.core_type<tc>, window_params = [{transform_indices = @transform_0, window_bounds = array<i64: 1, 8, 1024>}, {pipeline_mode = #tpu.pipeline_mode<synchronous>, transform_indices = @transform_1, window_bounds = array<i64: 1, 768>}, {pipeline_mode = #tpu.pipeline_mode<synchronous>, transform_indices = @transform_2, window_bounds = array<i64: 1, 768>}, {pipeline_mode = #tpu.pipeline_mode<synchronous>, transform_indices = @transform_3, window_bounds = array<i64: 4, 8, 80>}, {transform_indices = @transform_4, window_bounds = array<i64: 1, 1, 768>}]} {
    %cst = arith.constant 0.000000e+00 : f32
    %0 = vector.broadcast %cst : f32 to vector<8x1024xf32>
    %c0 = arith.constant 0 : index
    %c0_0 = arith.constant 0 : index
    %1 = vector.load %arg6[%c0, %c0_0] : memref<8x1024xf32, #tpu.memory_space<vmem>>, vector<8x1024xf32>
    tpu.vector_store %arg6[%c0, %c0_0], %0 {strides = array<i32>} : memref<8x1024xf32, #tpu.memory_space<vmem>>, vector<8x1024xf32>,
    %cst_1 = arith.constant 0.000000e+00 : f32
    %2 = vector.broadcast %cst_1 : f32 to vector<8x768xf32>
    %c72 = arith.constant 72 : index
    %c0_2 = arith.constant 0 : index
    %3 = vector.load %arg7[%c72, %c0_2] : memref<80x768xf32, #tpu.memory_space<vmem>>, vector<8x768xf32>
    tpu.vector_store %arg7[%c72, %c0_2], %2 {strides = array<i32>} : memref<80x768xf32, #tpu.memory_space<vmem>>, vector<8x768xf32>,
    %cst_3 = arith.constant 1.000000e+00 : f32
    %4 = vector.broadcast %cst_3 : f32 to vector<1x768xf32>
    %c72_4 = arith.constant 72 : index
    %c0_5 = arith.constant 0 : index
    %5 = vector.load %arg7[%c72_4, %c0_5] : memref<80x768xf32, #tpu.memory_space<vmem>>, vector<1x768xf32>
    tpu.vector_store %arg7[%c72_4, %c0_5], %4 {strides = array<i32>} : memref<80x768xf32, #tpu.memory_space<vmem>>, vector<1x768xf32>,
    %c0_6 = arith.constant 0 : index
    %c0_7 = arith.constant 0 : index
    %c128 = arith.constant 128 : index
    %6 = vector.load %arg1[%c0_6, %c0_7, %c128] : memref<1x8x1024xf32, #tpu.memory_space<vmem>>, vector<1x8x768xf32>
    %7 = vector.shape_cast %6 : vector<1x8x768xf32> to vector<8x768xf32>
    %c0_8 = arith.constant 0 : index
    %c0_9 = arith.constant 0 : index
    %8 = vector.load %arg7[%c0_8, %c0_9] : memref<80x768xf32, #tpu.memory_space<vmem>>, vector<8x768xf32>
    tpu.vector_store %arg7[%c0_8, %c0_9], %7 {strides = array<i32>} : memref<80x768xf32, #tpu.memory_space<vmem>>, vector<8x768xf32>,
    %c0_10 = arith.constant 0 : index
    %c0_11 = arith.constant 0 : index
    %c129 = arith.constant 129 : index
    %9 = vector.load %arg1[%c0_10, %c0_11, %c129] : memref<1x8x1024xf32, #tpu.memory_space<vmem>>, vector<1x8x768xf32>
    %10 = vector.shape_cast %9 : vector<1x8x768xf32> to vector<8x768xf32>
    %c8 = arith.constant 8 : index
    %c0_12 = arith.constant 0 : index
    %11 = vector.load %arg7[%c8, %c0_12] : memref<80x768xf32, #tpu.memory_space<vmem>>, vector<8x768xf32>
    tpu.vector_store %arg7[%c8, %c0_12], %10 {strides = array<i32>} : memref<80x768xf32, #tpu.memory_space<vmem>>, vector<8x768xf32>,
    %c0_13 = arith.constant 0 : index
    %c0_14 = arith.constant 0 : index
    %c130 = arith.constant 130 : index
    %12 = vector.load %arg1[%c0_13, %c0_14, %c130] : memref<1x8x1024xf32, #tpu.memory_space<vmem>>, vector<1x8x768xf32>
    %13 = vector.shape_cast %12 : vector<1x8x768xf32> to vector<8x768xf32>
    %c16 = arith.constant 16 : index
    %c0_15 = arith.constant 0 : index
    %14 = vector.load %arg7[%c16, %c0_15] : memref<80x768xf32, #tpu.memory_space<vmem>>, vector<8x768xf32>
    tpu.vector_store %arg7[%c16, %c0_15], %13 {strides = array<i32>} : memref<80x768xf32, #tpu.memory_space<vmem>>, vector<8x768xf32>,
    %c0_16 = arith.constant 0 : index
    %c0_17 = arith.constant 0 : index
    %c146 = arith.constant 146 : index
    %15 = vector.load %arg1[%c0_16, %c0_17, %c146] : memref<1x8x1024xf32, #tpu.memory_space<vmem>>, vector<1x8x768xf32>
    %16 = vector.shape_cast %15 : vector<1x8x768xf32> to vector<8x768xf32>
    %c24 = arith.constant 24 : index
    %c0_18 = arith.constant 0 : index
    %17 = vector.load %arg7[%c24, %c0_18] : memref<80x768xf32, #tpu.memory_space<vmem>>, vector<8x768xf32>
    tpu.vector_store %arg7[%c24, %c0_18], %16 {strides = array<i32>} : memref<80x768xf32, #tpu.memory_space<vmem>>, vector<8x768xf32>,
    %c0_19 = arith.constant 0 : index
    %c0_20 = arith.constant 0 : index
    %c147 = arith.constant 147 : index
    %18 = vector.load %arg1[%c0_19, %c0_20, %c147] : memref<1x8x1024xf32, #tpu.memory_space<vmem>>, vector<1x8x768xf32>
    %19 = vector.shape_cast %18 : vector<1x8x768xf32> to vector<8x768xf32>
    %c32 = arith.constant 32 : index
    %c0_21 = arith.constant 0 : index
    %20 = vector.load %arg7[%c32, %c0_21] : memref<80x768xf32, #tpu.memory_space<vmem>>, vector<8x768xf32>
    tpu.vector_store %arg7[%c32, %c0_21], %19 {strides = array<i32>} : memref<80x768xf32, #tpu.memory_space<vmem>>, vector<8x768xf32>,
    %c0_22 = arith.constant 0 : index
    %c0_23 = arith.constant 0 : index
    %c148 = arith.constant 148 : index
    %21 = vector.load %arg1[%c0_22, %c0_23, %c148] : memref<1x8x1024xf32, #tpu.memory_space<vmem>>, vector<1x8x768xf32>
    %22 = vector.shape_cast %21 : vector<1x8x768xf32> to vector<8x768xf32>
    %c40 = arith.constant 40 : index
    %c0_24 = arith.constant 0 : index
    %23 = vector.load %arg7[%c40, %c0_24] : memref<80x768xf32, #tpu.memory_space<vmem>>, vector<8x768xf32>
    tpu.vector_store %arg7[%c40, %c0_24], %22 {strides = array<i32>} : memref<80x768xf32, #tpu.memory_space<vmem>>, vector<8x768xf32>,
    %c0_25 = arith.constant 0 : index
    %c0_26 = arith.constant 0 : index
    %c164 = arith.constant 164 : index
    %24 = vector.load %arg1[%c0_25, %c0_26, %c164] : memref<1x8x1024xf32, #tpu.memory_space<vmem>>, vector<1x8x768xf32>
    %25 = vector.shape_cast %24 : vector<1x8x768xf32> to vector<8x768xf32>
    %c48 = arith.constant 48 : index
    %c0_27 = arith.constant 0 : index
    %26 = vector.load %arg7[%c48, %c0_27] : memref<80x768xf32, #tpu.memory_space<vmem>>, vector<8x768xf32>
    tpu.vector_store %arg7[%c48, %c0_27], %25 {strides = array<i32>} : memref<80x768xf32, #tpu.memory_space<vmem>>, vector<8x768xf32>,
    %c0_28 = arith.constant 0 : index
    %c0_29 = arith.constant 0 : index
    %c165 = arith.constant 165 : index
    %27 = vector.load %arg1[%c0_28, %c0_29, %c165] : memref<1x8x1024xf32, #tpu.memory_space<vmem>>, vector<1x8x768xf32>
    %28 = vector.shape_cast %27 : vector<1x8x768xf32> to vector<8x768xf32>
    %c56 = arith.constant 56 : index
    %c0_30 = arith.constant 0 : index
    %29 = vector.load %arg7[%c56, %c0_30] : memref<80x768xf32, #tpu.memory_space<vmem>>, vector<8x768xf32>
    tpu.vector_store %arg7[%c56, %c0_30], %28 {strides = array<i32>} : memref<80x768xf32, #tpu.memory_space<vmem>>, vector<8x768xf32>,
    %c0_31 = arith.constant 0 : index
    %c0_32 = arith.constant 0 : index
    %c166 = arith.constant 166 : index
    %30 = vector.load %arg1[%c0_31, %c0_32, %c166] : memref<1x8x1024xf32, #tpu.memory_space<vmem>>, vector<1x8x768xf32>
    %31 = vector.shape_cast %30 : vector<1x8x768xf32> to vector<8x768xf32>
    %c64 = arith.constant 64 : index
    %c0_33 = arith.constant 0 : index
    %32 = vector.load %arg7[%c64, %c0_33] : memref<80x768xf32, #tpu.memory_space<vmem>>, vector<8x768xf32>
    tpu.vector_store %arg7[%c64, %c0_33], %31 {strides = array<i32>} : memref<80x768xf32, #tpu.memory_space<vmem>>, vector<8x768xf32>,
    %c0_34 = arith.constant 0 : index
    %c0_35 = arith.constant 0 : index
    %c0_36 = arith.constant 0 : index
    %33 = vector.load %arg4[%c0_34, %c0_35, %c0_36] : memref<4x8x80xf32, #tpu.memory_space<vmem>>, vector<1x8x80xf32>
    %34 = vector.shape_cast %33 : vector<1x8x80xf32> to vector<8x80xf32>
    %c0_37 = arith.constant 0 : index
    %c0_38 = arith.constant 0 : index
    %35 = vector.load %arg7[%c0_37, %c0_38] : memref<80x768xf32, #tpu.memory_space<vmem>>, vector<80x768xf32>
    %cst_39 = arith.constant dense<0.000000e+00> : vector<8x768xf32>
    %36 = tpu.matmul %34, %35, %cst_39 {dimension_numbers = #tpu.dot_dimension_numbers<[1], [0], [0], [1], [0, 0, 1, 1], [], []>} : vector<8x80xf32>, vector<80x768xf32>, vector<8x768xf32> -> vector<8x768xf32>
    %cst_40 = arith.constant 0.000000e+00 : f32
    %37 = vector.broadcast %cst_40 : f32 to vector<8x768xf32>
    %38 = arith.maximumf %36, %37 : vector<8x768xf32>
    %c0_41 = arith.constant 0 : index
    %c128_42 = arith.constant 128 : index
    %39 = vector.load %arg6[%c0_41, %c128_42] : memref<8x1024xf32, #tpu.memory_space<vmem>>, vector<8x768xf32>
    tpu.vector_store %arg6[%c0_41, %c128_42], %38 {strides = array<i32>} : memref<8x1024xf32, #tpu.memory_space<vmem>>, vector<8x768xf32>,
    %c0_43 = arith.constant 0 : index
    %c128_44 = arith.constant 128 : index
    %40 = vector.load %arg6[%c0_43, %c128_44] : memref<8x1024xf32, #tpu.memory_space<vmem>>, vector<8x768xf32>
    %c0_45 = arith.constant 0 : index
    %c0_46 = arith.constant 0 : index
    %41 = vector.load %arg7[%c0_45, %c0_46] : memref<80x768xf32, #tpu.memory_space<vmem>>, vector<8x768xf32>
    tpu.vector_store %arg7[%c0_45, %c0_46], %40 {strides = array<i32>} : memref<80x768xf32, #tpu.memory_space<vmem>>, vector<8x768xf32>,
    %c0_47 = arith.constant 0 : index
    %c129_48 = arith.constant 129 : index
    %42 = vector.load %arg6[%c0_47, %c129_48] : memref<8x1024xf32, #tpu.memory_space<vmem>>, vector<8x768xf32>
    %c8_49 = arith.constant 8 : index
    %c0_50 = arith.constant 0 : index
    %43 = vector.load %arg7[%c8_49, %c0_50] : memref<80x768xf32, #tpu.memory_space<vmem>>, vector<8x768xf32>
    tpu.vector_store %arg7[%c8_49, %c0_50], %42 {strides = array<i32>} : memref<80x768xf32, #tpu.memory_space<vmem>>, vector<8x768xf32>,
    %c0_51 = arith.constant 0 : index
    %c130_52 = arith.constant 130 : index
    %44 = vector.load %arg6[%c0_51, %c130_52] : memref<8x1024xf32, #tpu.memory_space<vmem>>, vector<8x768xf32>
    %c16_53 = arith.constant 16 : index
    %c0_54 = arith.constant 0 : index
    %45 = vector.load %arg7[%c16_53, %c0_54] : memref<80x768xf32, #tpu.memory_space<vmem>>, vector<8x768xf32>
    tpu.vector_store %arg7[%c16_53, %c0_54], %44 {strides = array<i32>} : memref<80x768xf32, #tpu.memory_space<vmem>>, vector<8x768xf32>,
    %c0_55 = arith.constant 0 : index
    %c146_56 = arith.constant 146 : index
    %46 = vector.load %arg6[%c0_55, %c146_56] : memref<8x1024xf32, #tpu.memory_space<vmem>>, vector<8x768xf32>
    %c24_57 = arith.constant 24 : index
    %c0_58 = arith.constant 0 : index
    %47 = vector.load %arg7[%c24_57, %c0_58] : memref<80x768xf32, #tpu.memory_space<vmem>>, vector<8x768xf32>
    tpu.vector_store %arg7[%c24_57, %c0_58], %46 {strides = array<i32>} : memref<80x768xf32, #tpu.memory_space<vmem>>, vector<8x768xf32>,
    %c0_59 = arith.constant 0 : index
    %c147_60 = arith.constant 147 : index
    %48 = vector.load %arg6[%c0_59, %c147_60] : memref<8x1024xf32, #tpu.memory_space<vmem>>, vector<8x768xf32>
    %c32_61 = arith.constant 32 : index
    %c0_62 = arith.constant 0 : index
    %49 = vector.load %arg7[%c32_61, %c0_62] : memref<80x768xf32, #tpu.memory_space<vmem>>, vector<8x768xf32>
    tpu.vector_store %arg7[%c32_61, %c0_62], %48 {strides = array<i32>} : memref<80x768xf32, #tpu.memory_space<vmem>>, vector<8x768xf32>,
    %c0_63 = arith.constant 0 : index
    %c148_64 = arith.constant 148 : index
    %50 = vector.load %arg6[%c0_63, %c148_64] : memref<8x1024xf32, #tpu.memory_space<vmem>>, vector<8x768xf32>
    %c40_65 = arith.constant 40 : index
    %c0_66 = arith.constant 0 : index
    %51 = vector.load %arg7[%c40_65, %c0_66] : memref<80x768xf32, #tpu.memory_space<vmem>>, vector<8x768xf32>
    tpu.vector_store %arg7[%c40_65, %c0_66], %50 {strides = array<i32>} : memref<80x768xf32, #tpu.memory_space<vmem>>, vector<8x768xf32>,
    %c0_67 = arith.constant 0 : index
    %c164_68 = arith.constant 164 : index
    %52 = vector.load %arg6[%c0_67, %c164_68] : memref<8x1024xf32, #tpu.memory_space<vmem>>, vector<8x768xf32>
    %c48_69 = arith.constant 48 : index
    %c0_70 = arith.constant 0 : index
    %53 = vector.load %arg7[%c48_69, %c0_70] : memref<80x768xf32, #tpu.memory_space<vmem>>, vector<8x768xf32>
    tpu.vector_store %arg7[%c48_69, %c0_70], %52 {strides = array<i32>} : memref<80x768xf32, #tpu.memory_space<vmem>>, vector<8x768xf32>,
    %c0_71 = arith.constant 0 : index
    %c165_72 = arith.constant 165 : index
    %54 = vector.load %arg6[%c0_71, %c165_72] : memref<8x1024xf32, #tpu.memory_space<vmem>>, vector<8x768xf32>
    %c56_73 = arith.constant 56 : index
    %c0_74 = arith.constant 0 : index
    %55 = vector.load %arg7[%c56_73, %c0_74] : memref<80x768xf32, #tpu.memory_space<vmem>>, vector<8x768xf32>
    tpu.vector_store %arg7[%c56_73, %c0_74], %54 {strides = array<i32>} : memref<80x768xf32, #tpu.memory_space<vmem>>, vector<8x768xf32>,
    %c0_75 = arith.constant 0 : index
    %c166_76 = arith.constant 166 : index
    %56 = vector.load %arg6[%c0_75, %c166_76] : memref<8x1024xf32, #tpu.memory_space<vmem>>, vector<8x768xf32>
    %c64_77 = arith.constant 64 : index
    %c0_78 = arith.constant 0 : index
    %57 = vector.load %arg7[%c64_77, %c0_78] : memref<80x768xf32, #tpu.memory_space<vmem>>, vector<8x768xf32>
    tpu.vector_store %arg7[%c64_77, %c0_78], %56 {strides = array<i32>} : memref<80x768xf32, #tpu.memory_space<vmem>>, vector<8x768xf32>,
    %c1 = arith.constant 1 : index
    %c0_79 = arith.constant 0 : index
    %c0_80 = arith.constant 0 : index
    %58 = vector.load %arg4[%c1, %c0_79, %c0_80] : memref<4x8x80xf32, #tpu.memory_space<vmem>>, vector<1x8x80xf32>
    %59 = vector.shape_cast %58 : vector<1x8x80xf32> to vector<8x80xf32>
    %c0_81 = arith.constant 0 : index
    %c0_82 = arith.constant 0 : index
    %60 = vector.load %arg7[%c0_81, %c0_82] : memref<80x768xf32, #tpu.memory_space<vmem>>, vector<80x768xf32>
    %cst_83 = arith.constant dense<0.000000e+00> : vector<8x768xf32>
    %61 = tpu.matmul %59, %60, %cst_83 {dimension_numbers = #tpu.dot_dimension_numbers<[1], [0], [0], [1], [0, 0, 1, 1], [], []>} : vector<8x80xf32>, vector<80x768xf32>, vector<8x768xf32> -> vector<8x768xf32>
    %cst_84 = arith.constant 0.000000e+00 : f32
    %62 = vector.broadcast %cst_84 : f32 to vector<8x768xf32>
    %63 = arith.maximumf %61, %62 : vector<8x768xf32>
    %c0_85 = arith.constant 0 : index
    %c0_86 = arith.constant 0 : index
    %64 = vector.load %arg2[%c0_85, %c0_86] : memref<1x768xf32, #tpu.memory_space<vmem>>, vector<1x768xf32>
    %65 = vector.broadcast %64 : vector<1x768xf32> to vector<8x768xf32>
    %66 = arith.mulf %63, %65 : vector<8x768xf32>
    %c0_87 = arith.constant 0 : index
    %c128_88 = arith.constant 128 : index
    %67 = vector.load %arg6[%c0_87, %c128_88] : memref<8x1024xf32, #tpu.memory_space<vmem>>, vector<8x768xf32>
    tpu.vector_store %arg6[%c0_87, %c128_88], %66 {strides = array<i32>} : memref<8x1024xf32, #tpu.memory_space<vmem>>, vector<8x768xf32>,
    %c0_89 = arith.constant 0 : index
    %c109 = arith.constant 109 : index
    %68 = vector.load %arg6[%c0_89, %c109] : memref<8x1024xf32, #tpu.memory_space<vmem>>, vector<8x768xf32>
    %c0_90 = arith.constant 0 : index
    %c0_91 = arith.constant 0 : index
    %69 = vector.load %arg7[%c0_90, %c0_91] : memref<80x768xf32, #tpu.memory_space<vmem>>, vector<8x768xf32>
    tpu.vector_store %arg7[%c0_90, %c0_91], %68 {strides = array<i32>} : memref<80x768xf32, #tpu.memory_space<vmem>>, vector<8x768xf32>,
    %c0_92 = arith.constant 0 : index
    %c110 = arith.constant 110 : index
    %70 = vector.load %arg6[%c0_92, %c110] : memref<8x1024xf32, #tpu.memory_space<vmem>>, vector<8x768xf32>
    %c8_93 = arith.constant 8 : index
    %c0_94 = arith.constant 0 : index
    %71 = vector.load %arg7[%c8_93, %c0_94] : memref<80x768xf32, #tpu.memory_space<vmem>>, vector<8x768xf32>
    tpu.vector_store %arg7[%c8_93, %c0_94], %70 {strides = array<i32>} : memref<80x768xf32, #tpu.memory_space<vmem>>, vector<8x768xf32>,
    %c0_95 = arith.constant 0 : index
    %c111 = arith.constant 111 : index
    %72 = vector.load %arg6[%c0_95, %c111] : memref<8x1024xf32, #tpu.memory_space<vmem>>, vector<8x768xf32>
    %c16_96 = arith.constant 16 : index
    %c0_97 = arith.constant 0 : index
    %73 = vector.load %arg7[%c16_96, %c0_97] : memref<80x768xf32, #tpu.memory_space<vmem>>, vector<8x768xf32>
    tpu.vector_store %arg7[%c16_96, %c0_97], %72 {strides = array<i32>} : memref<80x768xf32, #tpu.memory_space<vmem>>, vector<8x768xf32>,
    %c0_98 = arith.constant 0 : index
    %c127 = arith.constant 127 : index
    %74 = vector.load %arg6[%c0_98, %c127] : memref<8x1024xf32, #tpu.memory_space<vmem>>, vector<8x768xf32>
    %c24_99 = arith.constant 24 : index
    %c0_100 = arith.constant 0 : index
    %75 = vector.load %arg7[%c24_99, %c0_100] : memref<80x768xf32, #tpu.memory_space<vmem>>, vector<8x768xf32>
    tpu.vector_store %arg7[%c24_99, %c0_100], %74 {strides = array<i32>} : memref<80x768xf32, #tpu.memory_space<vmem>>, vector<8x768xf32>,
    %c0_101 = arith.constant 0 : index
    %c128_102 = arith.constant 128 : index
    %76 = vector.load %arg6[%c0_101, %c128_102] : memref<8x1024xf32, #tpu.memory_space<vmem>>, vector<8x768xf32>
    %c32_103 = arith.constant 32 : index
    %c0_104 = arith.constant 0 : index
    %77 = vector.load %arg7[%c32_103, %c0_104] : memref<80x768xf32, #tpu.memory_space<vmem>>, vector<8x768xf32>
    tpu.vector_store %arg7[%c32_103, %c0_104], %76 {strides = array<i32>} : memref<80x768xf32, #tpu.memory_space<vmem>>, vector<8x768xf32>,
    %c0_105 = arith.constant 0 : index
    %c129_106 = arith.constant 129 : index
    %78 = vector.load %arg6[%c0_105, %c129_106] : memref<8x1024xf32, #tpu.memory_space<vmem>>, vector<8x768xf32>
    %c40_107 = arith.constant 40 : index
    %c0_108 = arith.constant 0 : index
    %79 = vector.load %arg7[%c40_107, %c0_108] : memref<80x768xf32, #tpu.memory_space<vmem>>, vector<8x768xf32>
    tpu.vector_store %arg7[%c40_107, %c0_108], %78 {strides = array<i32>} : memref<80x768xf32, #tpu.memory_space<vmem>>, vector<8x768xf32>,
    %c0_109 = arith.constant 0 : index
    %c145 = arith.constant 145 : index
    %80 = vector.load %arg6[%c0_109, %c145] : memref<8x1024xf32, #tpu.memory_space<vmem>>, vector<8x768xf32>
    %c48_110 = arith.constant 48 : index
    %c0_111 = arith.constant 0 : index
    %81 = vector.load %arg7[%c48_110, %c0_111] : memref<80x768xf32, #tpu.memory_space<vmem>>, vector<8x768xf32>
    tpu.vector_store %arg7[%c48_110, %c0_111], %80 {strides = array<i32>} : memref<80x768xf32, #tpu.memory_space<vmem>>, vector<8x768xf32>,
    %c0_112 = arith.constant 0 : index
    %c146_113 = arith.constant 146 : index
    %82 = vector.load %arg6[%c0_112, %c146_113] : memref<8x1024xf32, #tpu.memory_space<vmem>>, vector<8x768xf32>
    %c56_114 = arith.constant 56 : index
    %c0_115 = arith.constant 0 : index
    %83 = vector.load %arg7[%c56_114, %c0_115] : memref<80x768xf32, #tpu.memory_space<vmem>>, vector<8x768xf32>
    tpu.vector_store %arg7[%c56_114, %c0_115], %82 {strides = array<i32>} : memref<80x768xf32, #tpu.memory_space<vmem>>, vector<8x768xf32>,
    %c0_116 = arith.constant 0 : index
    %c147_117 = arith.constant 147 : index
    %84 = vector.load %arg6[%c0_116, %c147_117] : memref<8x1024xf32, #tpu.memory_space<vmem>>, vector<8x768xf32>
    %c64_118 = arith.constant 64 : index
    %c0_119 = arith.constant 0 : index
    %85 = vector.load %arg7[%c64_118, %c0_119] : memref<80x768xf32, #tpu.memory_space<vmem>>, vector<8x768xf32>
    tpu.vector_store %arg7[%c64_118, %c0_119], %84 {strides = array<i32>} : memref<80x768xf32, #tpu.memory_space<vmem>>, vector<8x768xf32>,
    %c2 = arith.constant 2 : index
    %c0_120 = arith.constant 0 : index
    %c0_121 = arith.constant 0 : index
    %86 = vector.load %arg4[%c2, %c0_120, %c0_121] : memref<4x8x80xf32, #tpu.memory_space<vmem>>, vector<1x8x80xf32>
    %87 = vector.shape_cast %86 : vector<1x8x80xf32> to vector<8x80xf32>
    %c0_122 = arith.constant 0 : index
    %c0_123 = arith.constant 0 : index
    %88 = vector.load %arg7[%c0_122, %c0_123] : memref<80x768xf32, #tpu.memory_space<vmem>>, vector<80x768xf32>
    %cst_124 = arith.constant dense<0.000000e+00> : vector<8x768xf32>
    %89 = tpu.matmul %87, %88, %cst_124 {dimension_numbers = #tpu.dot_dimension_numbers<[1], [0], [0], [1], [0, 0, 1, 1], [], []>} : vector<8x80xf32>, vector<80x768xf32>, vector<8x768xf32> -> vector<8x768xf32>
    %cst_125 = arith.constant 0.000000e+00 : f32
    %90 = vector.broadcast %cst_125 : f32 to vector<8x768xf32>
    %91 = arith.maximumf %89, %90 : vector<8x768xf32>
    %c0_126 = arith.constant 0 : index
    %c0_127 = arith.constant 0 : index
    %92 = vector.load %arg3[%c0_126, %c0_127] : memref<1x768xf32, #tpu.memory_space<vmem>>, vector<1x768xf32>
    %93 = vector.broadcast %92 : vector<1x768xf32> to vector<8x768xf32>
    %94 = arith.mulf %91, %93 : vector<8x768xf32>
    %c0_128 = arith.constant 0 : index
    %c128_129 = arith.constant 128 : index
    %95 = vector.load %arg6[%c0_128, %c128_129] : memref<8x1024xf32, #tpu.memory_space<vmem>>, vector<8x768xf32>
    tpu.vector_store %arg6[%c0_128, %c128_129], %94 {strides = array<i32>} : memref<8x1024xf32, #tpu.memory_space<vmem>>, vector<8x768xf32>,
    %c0_130 = arith.constant 0 : index
    %c109_131 = arith.constant 109 : index
    %96 = vector.load %arg6[%c0_130, %c109_131] : memref<8x1024xf32, #tpu.memory_space<vmem>>, vector<8x768xf32>
    %c0_132 = arith.constant 0 : index
    %c0_133 = arith.constant 0 : index
    %97 = vector.load %arg7[%c0_132, %c0_133] : memref<80x768xf32, #tpu.memory_space<vmem>>, vector<8x768xf32>
    tpu.vector_store %arg7[%c0_132, %c0_133], %96 {strides = array<i32>} : memref<80x768xf32, #tpu.memory_space<vmem>>, vector<8x768xf32>,
    %c0_134 = arith.constant 0 : index
    %c110_135 = arith.constant 110 : index
    %98 = vector.load %arg6[%c0_134, %c110_135] : memref<8x1024xf32, #tpu.memory_space<vmem>>, vector<8x768xf32>
    %c8_136 = arith.constant 8 : index
    %c0_137 = arith.constant 0 : index
    %99 = vector.load %arg7[%c8_136, %c0_137] : memref<80x768xf32, #tpu.memory_space<vmem>>, vector<8x768xf32>
    tpu.vector_store %arg7[%c8_136, %c0_137], %98 {strides = array<i32>} : memref<80x768xf32, #tpu.memory_space<vmem>>, vector<8x768xf32>,
    %c0_138 = arith.constant 0 : index
    %c111_139 = arith.constant 111 : index
    %100 = vector.load %arg6[%c0_138, %c111_139] : memref<8x1024xf32, #tpu.memory_space<vmem>>, vector<8x768xf32>
    %c16_140 = arith.constant 16 : index
    %c0_141 = arith.constant 0 : index
    %101 = vector.load %arg7[%c16_140, %c0_141] : memref<80x768xf32, #tpu.memory_space<vmem>>, vector<8x768xf32>
    tpu.vector_store %arg7[%c16_140, %c0_141], %100 {strides = array<i32>} : memref<80x768xf32, #tpu.memory_space<vmem>>, vector<8x768xf32>,
    %c0_142 = arith.constant 0 : index
    %c127_143 = arith.constant 127 : index
    %102 = vector.load %arg6[%c0_142, %c127_143] : memref<8x1024xf32, #tpu.memory_space<vmem>>, vector<8x768xf32>
    %c24_144 = arith.constant 24 : index
    %c0_145 = arith.constant 0 : index
    %103 = vector.load %arg7[%c24_144, %c0_145] : memref<80x768xf32, #tpu.memory_space<vmem>>, vector<8x768xf32>
    tpu.vector_store %arg7[%c24_144, %c0_145], %102 {strides = array<i32>} : memref<80x768xf32, #tpu.memory_space<vmem>>, vector<8x768xf32>,
    %c0_146 = arith.constant 0 : index
    %c128_147 = arith.constant 128 : index
    %104 = vector.load %arg6[%c0_146, %c128_147] : memref<8x1024xf32, #tpu.memory_space<vmem>>, vector<8x768xf32>
    %c32_148 = arith.constant 32 : index
    %c0_149 = arith.constant 0 : index
    %105 = vector.load %arg7[%c32_148, %c0_149] : memref<80x768xf32, #tpu.memory_space<vmem>>, vector<8x768xf32>
    tpu.vector_store %arg7[%c32_148, %c0_149], %104 {strides = array<i32>} : memref<80x768xf32, #tpu.memory_space<vmem>>, vector<8x768xf32>,
    %c0_150 = arith.constant 0 : index
    %c129_151 = arith.constant 129 : index
    %106 = vector.load %arg6[%c0_150, %c129_151] : memref<8x1024xf32, #tpu.memory_space<vmem>>, vector<8x768xf32>
    %c40_152 = arith.constant 40 : index
    %c0_153 = arith.constant 0 : index
    %107 = vector.load %arg7[%c40_152, %c0_153] : memref<80x768xf32, #tpu.memory_space<vmem>>, vector<8x768xf32>
    tpu.vector_store %arg7[%c40_152, %c0_153], %106 {strides = array<i32>} : memref<80x768xf32, #tpu.memory_space<vmem>>, vector<8x768xf32>,
    %c0_154 = arith.constant 0 : index
    %c145_155 = arith.constant 145 : index
    %108 = vector.load %arg6[%c0_154, %c145_155] : memref<8x1024xf32, #tpu.memory_space<vmem>>, vector<8x768xf32>
    %c48_156 = arith.constant 48 : index
    %c0_157 = arith.constant 0 : index
    %109 = vector.load %arg7[%c48_156, %c0_157] : memref<80x768xf32, #tpu.memory_space<vmem>>, vector<8x768xf32>
    tpu.vector_store %arg7[%c48_156, %c0_157], %108 {strides = array<i32>} : memref<80x768xf32, #tpu.memory_space<vmem>>, vector<8x768xf32>,
    %c0_158 = arith.constant 0 : index
    %c146_159 = arith.constant 146 : index
    %110 = vector.load %arg6[%c0_158, %c146_159] : memref<8x1024xf32, #tpu.memory_space<vmem>>, vector<8x768xf32>
    %c56_160 = arith.constant 56 : index
    %c0_161 = arith.constant 0 : index
    %111 = vector.load %arg7[%c56_160, %c0_161] : memref<80x768xf32, #tpu.memory_space<vmem>>, vector<8x768xf32>
    tpu.vector_store %arg7[%c56_160, %c0_161], %110 {strides = array<i32>} : memref<80x768xf32, #tpu.memory_space<vmem>>, vector<8x768xf32>,
    %c0_162 = arith.constant 0 : index
    %c147_163 = arith.constant 147 : index
    %112 = vector.load %arg6[%c0_162, %c147_163] : memref<8x1024xf32, #tpu.memory_space<vmem>>, vector<8x768xf32>
    %c64_164 = arith.constant 64 : index
    %c0_165 = arith.constant 0 : index
    %113 = vector.load %arg7[%c64_164, %c0_165] : memref<80x768xf32, #tpu.memory_space<vmem>>, vector<8x768xf32>
    tpu.vector_store %arg7[%c64_164, %c0_165], %112 {strides = array<i32>} : memref<80x768xf32, #tpu.memory_space<vmem>>, vector<8x768xf32>,
    %c3 = arith.constant 3 : index
    %c0_166 = arith.constant 0 : index
    %c0_167 = arith.constant 0 : index
    %114 = vector.load %arg4[%c3, %c0_166, %c0_167] : memref<4x8x80xf32, #tpu.memory_space<vmem>>, vector<1x8x80xf32>
    %115 = vector.shape_cast %114 : vector<1x8x80xf32> to vector<8x80xf32>
    %c0_168 = arith.constant 0 : index
    %c0_169 = arith.constant 0 : index
    %116 = vector.load %arg7[%c0_168, %c0_169] : memref<80x768xf32, #tpu.memory_space<vmem>>, vector<80x768xf32>
    %cst_170 = arith.constant dense<0.000000e+00> : vector<8x768xf32>
    %117 = tpu.matmul %115, %116, %cst_170 {dimension_numbers = #tpu.dot_dimension_numbers<[1], [0], [0], [1], [0, 0, 1, 1], [], []>} : vector<8x80xf32>, vector<80x768xf32>, vector<8x768xf32> -> vector<8x768xf32>
    %118 = vector.extract_strided_slice %117 {offsets = [0, 0], sizes = [1, 768], strides = [1, 1]} : vector<8x768xf32> to vector<1x768xf32>
    %119 = arith.negf %118 : vector<1x768xf32>
    %120 = math.exp %119 : vector<1x768xf32>
    %cst_171 = arith.constant 1.000000e+00 : f32
    %121 = vector.broadcast %cst_171 : f32 to vector<1x768xf32>
    %122 = arith.addf %121, %120 : vector<1x768xf32>
    %123 = arith.divf %121, %122 : vector<1x768xf32>
    %c0_172 = arith.constant 0 : index
    %c0_173 = arith.constant 0 : index
    %c0_174 = arith.constant 0 : index
    %124 = vector.load %arg5[%c0_172, %c0_173, %c0_174] : memref<1x1x768xf32, #tpu.memory_space<vmem>>, vector<1x1x768xf32>
    %125 = vector.shape_cast %124 : vector<1x1x768xf32> to vector<1x768xf32>
    %126 = vector.shape_cast %123 : vector<1x768xf32> to vector<1x1x768xf32>
    tpu.vector_store %arg5[%c0_172, %c0_173, %c0_174], %126 {strides = array<i32>} : memref<1x1x768xf32, #tpu.memory_space<vmem>>, vector<1x1x768xf32>,
    return
  }
  func.func @transform_0(%arg0: i32) -> (i32, i32, i32) {
    %c0_i32 = arith.constant 0 : i32
    %c0_i32_0 = arith.constant 0 : i32
    %c0_i32_1 = arith.constant 0 : i32
    return %arg0, %c0_i32, %c0_i32_0 : i32, i32, i32
  }
  func.func @transform_1(%arg0: i32) -> (i32, i32) {
    %c0_i32 = arith.constant 0 : i32
    %c0_i32_0 = arith.constant 0 : i32
    %c0_i32_1 = arith.constant 0 : i32
    return %c0_i32, %c0_i32_0 : i32, i32
  }
  func.func @transform_2(%arg0: i32) -> (i32, i32) {
    %c0_i32 = arith.constant 0 : i32
    %c0_i32_0 = arith.constant 0 : i32
    %c0_i32_1 = arith.constant 0 : i32
    return %c0_i32, %c0_i32_0 : i32, i32
  }
  func.func @transform_3(%arg0: i32) -> (i32, i32, i32) {
    %c0_i32 = arith.constant 0 : i32
    %c0_i32_0 = arith.constant 0 : i32
    %c0_i32_1 = arith.constant 0 : i32
    %c0_i32_2 = arith.constant 0 : i32
    return %c0_i32, %c0_i32_0, %c0_i32_1 : i32, i32, i32
  }
  func.func @transform_4(%arg0: i32) -> (i32, i32, i32) {
    %c0_i32 = arith.constant 0 : i32
    %c0_i32_0 = arith.constant 0 : i32
    %c0_i32_1 = arith.constant 0 : i32
    return %arg0, %c0_i32, %c0_i32_0 : i32, i32, i32
  }
}

</mosaic_0001>

<bundles_post_ra>
// kernel: tile.9
= control target key start
LH: loop header
LB: loop body
LE: loop exit
PB: predicated region body
PF: predicated region fallthrough
CT: control target
= control target key end

     0   :  { %vm9_vm0 = vcmask 15360   ;;  %vm22_vm1 = vcmask 31744   ;;  %s173_s14 = smov 126   ;;  %s174_s15 = smov 108   ;;  %vm3_vm2 = vcmask 146432   ;;  %vm13_vm3 = vcmask 130048   ;;  %s263_s0 = inlined_call_operand.vmem [shape: f32[18,18], index: 0, kind: input, shape index: {}]   ;;  %s264_s1 = inlined_call_operand.vmem [shape: f32[324], index: 1, kind: output, shape index: {}]  }
   0x1   :  { %v137_v0 = vld [vmem:[%s263_s0 + $0x7] sm:$0x1]   ;;  %v141_v3 = vld [vmem:[%s263_s0 + $0x6] sm:$0x1]   ;;  %v139_v4 = vld [vmem:[%s263_s0 + $0xe] sm:$0x1]  }
   0x2   :  { %v138_v1 = vld [vmem:[%s263_s0 + $0x7] sm:$0x1]   ;;  %34 = vrot.lane.b32.xlu1 %v141_v3, %s174_s15  ;;  %v140_v5 = vld [vmem:[%s263_s0 + $0xe] sm:$0x1]   ;;  %v142_v7 = vld [vmem:[%s263_s0 + $0xd] sm:$0x1]  }
   0x3   :  { %v10_v2 = vsel %vm9_vm0, %v138_v1, %v137_v0  ;;  %v23_v6 = vsel %vm22_vm1, %v140_v5, %v139_v4  ;;  %s175_s20 = smov 124   ;;  %s176_s21 = smov 106   ;;  %v143_v8 = vld [vmem:[%s263_s0 + $0x5] sm:$0x1]   ;;  %v144_v9 = vld [vmem:[%s263_s0 + $0xc] sm:$0x1]  }
   0x4   :  { %11 = vrot.lane.b32.xlu0 %v10_v2, %s173_s14  ;;  %s177_s26 = smov 90   ;;  %s178_s27 = smov 88   ;;  %v2_v10 = vld [vmem:[%s263_s0] sm:$0x1]   ;;  %v145_v11 = vld [vmem:[%s263_s0 + $0x4] sm:$0x1]  }
   0x5   :  { %v146_v12 = vld [vmem:[%s263_s0 + $0xb] sm:$0x1]   ;;  %4 = vst.msk [vmem:[#allocation0] sm:$0x1] %vm3_vm2, %v2_v10   ;;  %s179_s5 = smov 72   ;;  %s180_s6 = smov 70  }
   0x6   :  { %40 = vrot.lane.b32.xlu1 %v142_v7, %s176_s21  ;;  %v147_v13 = vld [vmem:[%s263_s0 + $0x3] sm:$0x1]   ;;  %v148_v14 = vld [vmem:[%s263_s0 + $0xa] sm:$0x1]   ;;  %s181_s11 = smov 54   ;;  %s182_s12 = smov 52  }
   0x7   :  { %v149_v15 = vld [vmem:[%s263_s0 + $0x11] sm:$0x1]   ;;  %v150_v16 = vld [vmem:[%s263_s0 + $0x2] sm:$0x1]   ;;  %s183_s17 = smov 50   ;;  %s184_s18 = smov 36  }
   0x8   :  { %24 = vrot.lane.b32.xlu0 %v23_v6, %s175_s20  ;;  %v151_v17 = vld [vmem:[%s263_s0 + $0x9] sm:$0x1]   ;;  %v152_v18 = vld [vmem:[%s263_s0 + $0x10] sm:$0x1]   ;;  %s185_s23 = smov 34   ;;  %s186_s24 = smov 32  }
   0x9   :  { %v153_v19 = vld [vmem:[%s263_s0 + $0x1] sm:$0x1]   ;;  %v154_v20 = vld [vmem:[%s263_s0 + $0x8] sm:$0x1]   ;;  %s187_s29 = smov 18   ;;  %s188_s30 = smov 16  }
   0xa   :  { %53 = vrot.lane.b32.xlu1 %v144_v9, %s178_s27  ;;  %v155_v21 = vld [vmem:[%s263_s0 + $0xf] sm:$0x1]   ;;  %s189_s0 = smov 14   ;;  %vm16_vm4 = vcmask 1048560   ;;  %vm36_vm5 = vcmask 1032032   ;;  %vm26_vm6 = vcmask 113664  }
   0xb   :  { %vm29_vm7 = vcmask 1048544   ;;  %vm42_vm8 = vcmask 1015632   ;;  %vm49_vm9 = vcmask 884432   ;;  %vm55_vm10 = vcmask 868032  }
   0xc   :  { %47 = vrot.lane.b32.xlu0 %v143_v8, %s177_s26  ;;  %vm62_vm11 = vcmask 736832   ;;  %vm68_vm12 = vcmask 720432   ;;  %vm75_vm13 = vcmask 589232   ;;  %vm81_vm14 = vcmask 572832  }
   0xd   :  { %vm88_vm15 = vcmask 556432   ;;  %vm95_vm0 = vcmask 441632   ;;  %vm101_vm1 = vcmask 425232   ;;  %vm108_vm2 = vcmask 408832  }
   0xe   :  { %66 = vrot.lane.b32.xlu1 %v146_v12, %s180_s6 }
  0x10   :  { %60 = vrot.lane.b32.xlu0 %v145_v11, %s179_s5 }
  0x12   :  { %79 = vrot.lane.b32.xlu1 %v148_v14, %s182_s12 }
  0x14   :  { %73 = vrot.lane.b32.xlu0 %v147_v13, %s181_s11 }
  0x16   :  { %93 = vrot.lane.b32.xlu1 %v150_v16, %s184_s18 }
  0x18   :  { %86 = vrot.lane.b32.xlu0 %v149_v15, %s183_s17 }
  0x1a   :  { %106 = vrot.lane.b32.xlu1 %v152_v18, %s186_s24 }
  0x1c   :  { %99 = vrot.lane.b32.xlu0 %v151_v17, %s185_s23 }
  0x1e   :  { %119 = vrot.lane.b32.xlu1 %v154_v20, %s188_s30 }
  0x20   :  { %113 = vrot.lane.b32.xlu0 %v153_v19, %s187_s29 }
  0x24   :  { %126 = vrot.lane.b32.xlu0 %v155_v21, %s189_s0 }
  0x74   :  { %v35_v23 = vpop.permute.xlu1 %34  }
  0x76   :  { %v12_v22 = vpop.permute.xlu0 %11  }
  0x77   :  { %15 = vst.msk [vmem:[#allocation0 + $0x1] sm:$0x1] %vm13_vm3, %v12_v22   ;;  %vm115_vm3 = vcmask 294032  }
  0x78   :  { %17 = vst.msk [vmem:[#allocation0] sm:$0x1] %vm16_vm4, %v12_v22   ;;  %v41_v25 = vpop.permute.xlu1 %40   ;;  %vm121_vm4 = vcmask 277632  }
  0x79   :  { %37 = vst.msk [vmem:[#allocation0] sm:$0x1] %vm36_vm5, %v35_v23   ;;  %vm128_vm5 = vcmask 261232  }
  0x7a   :  { %v25_v24 = vpop.permute.xlu0 %24  }
  0x7b   :  { %28 = vst.msk [vmem:[#allocation0 + $0x2] sm:$0x1] %vm26_vm6, %v25_v24  }
  0x7c   :  { %31 = vst.msk [vmem:[#allocation0 + $0x1] sm:$0x1] %vm29_vm7, %v25_v24   ;;  %v54_v27 = vpop.permute.xlu1 %53  }
  0x7d   :  { %44 = vst.msk [vmem:[#allocation0 + $0x1] sm:$0x1] %vm42_vm8, %v41_v25  }
  0x7e   :  { %v48_v26 = vpop.permute.xlu0 %47   ;;  %57 = vst.msk [vmem:[#allocation0 + $0x1] sm:$0x1] %vm55_vm10, %v54_v27  }
  0x7f   :  { %50 = vst.msk [vmem:[#allocation0] sm:$0x1] %vm49_vm9, %v48_v26  }
  0x80   :  { %v67_v29 = vpop.permute.xlu1 %66  }
  0x81   :  { %70 = vst.msk [vmem:[#allocation0 + $0x1] sm:$0x1] %vm68_vm12, %v67_v29  }
  0x82   :  { %v61_v28 = vpop.permute.xlu0 %60  }
  0x83   :  { %63 = vst.msk [vmem:[#allocation0] sm:$0x1] %vm62_vm11, %v61_v28  }
  0x84   :  { %v80_v31 = vpop.permute.xlu1 %79  }
  0x85   :  { %83 = vst.msk [vmem:[#allocation0 + $0x1] sm:$0x1] %vm81_vm14, %v80_v31  }
  0x86   :  { %v74_v30 = vpop.permute.xlu0 %73  }
  0x87   :  { %76 = vst.msk [vmem:[#allocation0] sm:$0x1] %vm75_vm13, %v74_v30  }
  0x88   :  { %v94_v33 = vpop.permute.xlu1 %93  }
  0x89   :  { %96 = vst.msk [vmem:[#allocation0] sm:$0x1] %vm95_vm0, %v94_v33  }
  0x8a   :  { %v87_v32 = vpop.permute.xlu0 %86  }
  0x8b   :  { %90 = vst.msk [vmem:[#allocation0 + $0x2] sm:$0x1] %vm88_vm15, %v87_v32  }
  0x8c   :  { %v107_v35 = vpop.permute.xlu1 %106  }
  0x8d   :  { %110 = vst.msk [vmem:[#allocation0 + $0x2] sm:$0x1] %vm108_vm2, %v107_v35  }
  0x8e   :  { %v100_v34 = vpop.permute.xlu0 %99  }
  0x8f   :  { %103 = vst.msk [vmem:[#allocation0 + $0x1] sm:$0x1] %vm101_vm1, %v100_v34  }
  0x90   :  { %v120_v37 = vpop.permute.xlu1 %119  }
  0x91   :  { %123 = vst.msk [vmem:[#allocation0 + $0x1] sm:$0x1] %vm121_vm4, %v120_v37  }
  0x92   :  { %v114_v36 = vpop.permute.xlu0 %113  }
  0x93   :  { %116 = vst.msk [vmem:[#allocation0] sm:$0x1] %vm115_vm3, %v114_v36  }
  0x96   :  { %v127_v38 = vpop.permute.xlu0 %126  }
  0x97   :  { %130 = vst.msk [vmem:[#allocation0 + $0x2] sm:$0x1] %vm128_vm5, %v127_v38  }
  0x9e   :  { %v134_v39 = vld [vmem:[#allocation0] sm:$0xf] }
  0x9f   :  { %136 = vst [vmem:[%s264_s1] sm:$0xf] %v134_v39 }

// kernel: tile.10
= control target key start
LH: loop header
LB: loop body
LE: loop exit
PB: predicated region body
PF: predicated region fallthrough
CT: control target
= control target key end

     0   :  { %s46_s0 = inlined_call_operand.vmem [shape: f32[324], index: 0, kind: input, shape index: {}]   ;;  %s47_s1 = inlined_call_operand.vmem [shape: f32[2,324], index: 1, kind: output, shape index: {}]  }
   0x1   :  { %v4_v0 = vld [vmem:[%s46_s0] ss:$0 sm:$0xff]  ;;  %v14_v1 = vld [vmem:[%s46_s0 + $0x1] ss:$0 sm:$0xff]  ;;  %v16_v2 = vld [vmem:[%s46_s0 + $0x2] ss:$0 sm:$0xff] }
   0x2   :  { %5 = vst [vmem:[%s47_s1] sm:$0x3] %v4_v0  ;;  %15 = vst [vmem:[%s47_s1 + $0x2] sm:$0x3] %v14_v1 }
   0x3   :  { %17 = vst [vmem:[%s47_s1 + $0x4] sm:$0x3] %v16_v2 }

// kernel: tile.11
= control target key start
LH: loop header
LB: loop body
LE: loop exit
PB: predicated region body
PF: predicated region fallthrough
CT: control target
= control target key end

     0   :  { %vm27_vm0 = vcmask 490496   ;;  %vm17_vm1 = vcmask 556032   ;;  %s38_s12 = smov 3  ;;  %s53_s13 = smov 68   ;;  %vm31_vm2 = vcmask 64512   ;;  %vm34_vm3 = vcmask 1048096   ;;  %s90_s0 = inlined_call_operand.vmem [shape: f32[2,324], index: 0, kind: input, shape index: {}]   ;;  %s91_s1 = inlined_call_operand.vmem [shape: f32[648], index: 1, kind: output, shape index: {}]  }
   0x1   :  { %v46_v0 = vld [vmem:[%s90_s0 + $0x4] sm:$0x3]  ;;  %v47_v1 = vld [vmem:[%s90_s0 + $0x2] sm:$0x3]  ;;  %v13_v2 = vld [vmem:[%s90_s0] sm:$0x3] }
   0x2   :  { %8 = vst [vmem:[#allocation0 + $0x10] sm:$0x3] %v46_v0  ;;  %12 = vst [vmem:[#allocation0 + $0x8] sm:$0x3] %v47_v1  ;;  %s20_s0 = smov 3 }
   0x3   :  { %14 = vst [vmem:[#allocation0] sm:$0x3] %v13_v2 }
   0x9   :  { %v24_v3 = vld [vmem:[#allocation0 + $0x11] sm:$0x1]   ;;  %v16_v7 = vld [vmem:[#allocation0 + $0x10] sm:$0x1]  }
   0xa   :  { %v26_v4 = vld [vmem:[#allocation0 + $0x1] ss:$8 sm:$0x7]   ;;  %v21_v6 = vld [vmem:[#allocation0] ss:$8 sm:%s20_s0]  }
   0xb   :  { %v28_v5 = vsel %vm27_vm0, %v26_v4, %v24_v3  ;;  %22 = vst [vmem:[%s91_s1] sm:$0x3] %v21_v6   ;;  %48 = vst.msk [vmem:[%s91_s1 + $0x2] sm:$0x1] %vm17_vm1, %v16_v7   ;;  %v39_v8 = vld [vmem:[#allocation0 + $0x1] ss:$8 sm:%s38_s12]  }
   0xc   :  { %29 = vrot.lane.b32.xlu0 %v28_v5, %s53_s13 }
  0x10   :  { %40 = vrot.lane.b32.xlu0 %v39_v8, %s53_s13 }
  0x7e   :  { %v30_v9 = vpop.permute.xlu0 %29  }
  0x7f   :  { %49 = vst.msk [vmem:[%s91_s1 + $0x5] sm:$0x1] %vm31_vm2, %v30_v9  }
  0x80   :  { %50 = vst.msk [vmem:[%s91_s1 + $0x2] sm:$0x7] %vm34_vm3, %v30_v9  }
  0x82   :  { %v41_v10 = vpop.permute.xlu0 %40  }
  0x83   :  { %51 = vst.msk [vmem:[%s91_s1 + $0x3] sm:$0x3] %vm17_vm1, %v41_v10  }

// kernel: squeeze.1
= control target key start
LH: loop header
LB: loop body
LE: loop exit
PB: predicated region body
PF: predicated region fallthrough
CT: control target
= control target key end

     0   :  { %s386_s10 = smov 118   ;;  %s387_s11 = smov 114   ;;  %vm213_vm0 = vcmask 965632   ;;  %vm227_vm1 = vcmask 982016   ;;  %vm241_vm2 = vcmask 998400   ;;  %vm255_vm3 = vcmask 1014784   ;;  %s708_s0 = inlined_call_operand.vmem [shape: f32[648], index: 0, kind: input, shape index: {}]   ;;  %s709_s1 = inlined_call_operand.vmem [shape: f32[2,18,18], index: 1, kind: output, shape index: {}]  }
   0x1   :  { %v278_v0 = vld [vmem:[%s708_s0 + $0x4] sm:$0x1]   ;;  %v282_v1 = vld [vmem:[%s708_s0 + $0x2] sm:$0x1]   ;;  %v280_v2 = vld [vmem:[%s708_s0 + $0x3] sm:$0x1]  }
   0x2   :  { %7 = vrot.lane.b32.xlu0 %v278_v0, %s386_s10  ;;  %21 = vrot.lane.b32.xlu1 %v282_v1, %s387_s11  ;;  %v284_v3 = vld [vmem:[%s708_s0 + $0x1] sm:$0x1]   ;;  %s388_s16 = smov 116   ;;  %s389_s17 = smov 112   ;;  %v33_v4 = vld [vmem:[%s708_s0] sm:$0x1]  }
   0x3   :  { %v287_v5 = vld [vmem:[%s708_s0 + $0x4] sm:$0x1]   ;;  %v333_v7 = vld [vmem:[%s708_s0 + $0x5] sm:$0x1]   ;;  %v336_v8 = vld [vmem:[%s708_s0 + $0x3] sm:$0x1]  }
   0x4   :  { %v332_v6 = vld [vmem:[%s708_s0 + $0x4] sm:$0x1]   ;;  %s390_s30 = smov 110   ;;  %s391_s2 = smov 100   ;;  %v340_v12 = vld [vmem:[%s708_s0 + $0x2] sm:$0x1]  }
   0x5   :  { %v337_v9 = vld [vmem:[%s708_s0 + $0x4] sm:$0x1]   ;;  %v214_v10 = vsel %vm213_vm0, %v333_v7, %v332_v6  ;;  %v341_v13 = vld [vmem:[%s708_s0 + $0x3] sm:$0x1]   ;;  %v344_v14 = vld [vmem:[%s708_s0 + $0x1] sm:$0x1]  }
   0x6   :  { %14 = vrot.lane.b32.xlu0 %v280_v2, %s388_s16  ;;  %28 = vrot.lane.b32.xlu1 %v284_v3, %s389_s17  ;;  %v228_v11 = vsel %vm227_vm1, %v337_v9, %v336_v8  ;;  %v345_v15 = vld [vmem:[%s708_s0 + $0x2] sm:$0x1]   ;;  %s392_s11 = smov 10   ;;  %s393_s12 = smov 8   ;;  %v242_v16 = vsel %vm241_vm2, %v341_v13, %v340_v12  ;;  %v265_v18 = vld [vmem:[%s708_s0] sm:$0x1]  }
   0x7   :  { %v256_v17 = vsel %vm255_vm3, %v345_v15, %v344_v14  ;;  %v348_v19 = vld [vmem:[%s708_s0 + $0x1] sm:$0x1]   ;;  %vm268_vm4 = vcmask 1031168   ;;  %s394_s17 = smov 6   ;;  %s395_s18 = smov 4   ;;  %vm3_vm5 = vcmask 146432  }
   0x8   :  { %v269_v20 = vsel %vm268_vm4, %v348_v19, %v265_v18  ;;  %v289_v21 = vld [vmem:[%s708_s0 + $0x3] sm:$0x1]   ;;  %s396_s21 = smov 2   ;;  %s397_s22 = smov 98   ;;  %v291_v22 = vld [vmem:[%s708_s0 + $0x2] sm:$0x1]  }
   0x9   :  { %v293_v23 = vld [vmem:[%s708_s0 + $0x1] sm:$0x1]   ;;  %s398_s27 = smov 96   ;;  %s399_s28 = smov 94   ;;  %v67_v24 = vld [vmem:[%s708_s0] sm:$0x1]  }
   0xa   :  { %34 = vrot.lane.b32.xlu0 %v33_v4, %s390_s30  ;;  %41 = vrot.lane.b32.xlu1 %v287_v5, %s391_s2  ;;  %v296_v25 = vld [vmem:[%s708_s0 + $0x4] sm:$0x1]   ;;  %s400_s4 = smov 92   ;;  %s401_s5 = smov 82   ;;  %v298_v26 = vld [vmem:[%s708_s0 + $0x3] sm:$0x1]  }
   0xb   :  { %v300_v27 = vld [vmem:[%s708_s0 + $0x2] sm:$0x1]   ;;  %s402_s10 = smov 80   ;;  %v302_v28 = vld [vmem:[%s708_s0 + $0x1] sm:$0x1]   ;;  %s404_s16 = smov 76  }
   0xc   :  { %v101_v29 = vld [vmem:[%s708_s0] sm:$0x1]   ;;  %v305_v30 = vld [vmem:[%s708_s0 + $0x4] sm:$0x1]   ;;  %v307_v31 = vld [vmem:[%s708_s0 + $0x3] sm:$0x1]  }
   0xd   :  { %s407_s23 = smov 62   ;;  %v309_v32 = vld [vmem:[%s708_s0 + $0x2] sm:$0x1]   ;;  %v311_v33 = vld [vmem:[%s708_s0 + $0x1] sm:$0x1]   ;;  %s409_s29 = smov 58  }
   0xe   :  { %215 = vrot.lane.b32.xlu0 %v214_v10, %s392_s11  ;;  %229 = vrot.lane.b32.xlu1 %v228_v11, %s393_s12  ;;  %s403_s11 = smov 78   ;;  %v135_v34 = vld [vmem:[%s708_s0] sm:$0x1]   ;;  %v314_v35 = vld [vmem:[%s708_s0 + $0x4] sm:$0x1]   ;;  %s411_s6 = smov 46  }
   0xf   :  { %v316_v36 = vld [vmem:[%s708_s0 + $0x3] sm:$0x1]   ;;  %v318_v37 = vld [vmem:[%s708_s0 + $0x2] sm:$0x1]   ;;  %s413_s12 = smov 42   ;;  %vm217_vm6 = vcmask 80896  }
  0x10   :  { %v320_v38 = vld [vmem:[%s708_s0 + $0x1] sm:$0x1]   ;;  %v169_v39 = vld [vmem:[%s708_s0] sm:$0x1]   ;;  %v323_v41 = vld [vmem:[%s708_s0 + $0x4] sm:$0x1]  }
  0x11   :  { %v2_v40 = vld [vmem:[%s708_s0] sm:$0x1]   ;;  %v325_v42 = vld [vmem:[%s708_s0 + $0x3] sm:$0x1]   ;;  %v327_v43 = vld [vmem:[%s708_s0 + $0x2] sm:$0x1]  }
  0x12   :  { %243 = vrot.lane.b32.xlu0 %v242_v16, %s394_s17  ;;  %257 = vrot.lane.b32.xlu1 %v256_v17, %s395_s18  ;;  %s405_s17 = smov 74   ;;  %4 = vst.msk [vmem:[%s709_s1] sm:$0x1] %vm3_vm5, %v2_v40   ;;  %v329_v44 = vld [vmem:[%s708_s0 + $0x1] sm:$0x1]   ;;  %vm231_vm7 = vcmask 64512  }
  0x13   :  { %v203_v45 = vld [vmem:[%s708_s0] sm:$0x1]   ;;  %s420_s0 = smov 20   ;;  %vm220_vm8 = vcmask 146512   ;;  %vm234_vm9 = vcmask 146496   ;;  %vm245_vm10 = vcmask 48128  }
  0x14   :  { %vm259_vm11 = vcmask 31744   ;;  %vm248_vm12 = vcmask 146480   ;;  %vm262_vm13 = vcmask 146464   ;;  %vm272_vm14 = vcmask 15360  }
  0x15   :  { %vm275_vm15 = vcmask 146448  }
  0x16   :  { %270 = vrot.lane.b32.xlu0 %v269_v20, %s396_s21  ;;  %48 = vrot.lane.b32.xlu1 %v289_v21, %s397_s22  ;;  %s406_s22 = smov 64   ;;  %s414_s21 = smov 40  }
  0x1a   :  { %55 = vrot.lane.b32.xlu0 %v291_v22, %s398_s27  ;;  %62 = vrot.lane.b32.xlu1 %v293_v23, %s399_s28  ;;  %s408_s28 = smov 60   ;;  %s416_s27 = smov 28  }
  0x1e   :  { %68 = vrot.lane.b32.xlu0 %v67_v24, %s400_s4  ;;  %75 = vrot.lane.b32.xlu1 %v296_v25, %s401_s5  ;;  %s410_s5 = smov 56   ;;  %s418_s4 = smov 24  }
  0x22   :  { %82 = vrot.lane.b32.xlu0 %v298_v26, %s402_s10  ;;  %89 = vrot.lane.b32.xlu1 %v300_v27, %s403_s11  ;;  %s412_s11 = smov 44  }
  0x26   :  { %96 = vrot.lane.b32.xlu0 %v302_v28, %s404_s16  ;;  %102 = vrot.lane.b32.xlu1 %v101_v29, %s405_s17 }
  0x2a   :  { %109 = vrot.lane.b32.xlu0 %v305_v30, %s406_s22  ;;  %116 = vrot.lane.b32.xlu1 %v307_v31, %s407_s23  ;;  %s415_s22 = smov 38  }
  0x2e   :  { %123 = vrot.lane.b32.xlu0 %v309_v32, %s408_s28  ;;  %130 = vrot.lane.b32.xlu1 %v311_v33, %s409_s29  ;;  %s417_s28 = smov 26  }
  0x32   :  { %136 = vrot.lane.b32.xlu0 %v135_v34, %s410_s5  ;;  %143 = vrot.lane.b32.xlu1 %v314_v35, %s411_s6  ;;  %s419_s5 = smov 22  }
  0x36   :  { %150 = vrot.lane.b32.xlu0 %v316_v36, %s412_s11  ;;  %157 = vrot.lane.b32.xlu1 %v318_v37, %s413_s12 }
  0x3a   :  { %164 = vrot.lane.b32.xlu0 %v320_v38, %s414_s21  ;;  %170 = vrot.lane.b32.xlu1 %v169_v39, %s415_s22 }
  0x3e   :  { %177 = vrot.lane.b32.xlu0 %v323_v41, %s416_s27  ;;  %184 = vrot.lane.b32.xlu1 %v325_v42, %s417_s28 }
  0x42   :  { %191 = vrot.lane.b32.xlu0 %v327_v43, %s418_s4  ;;  %198 = vrot.lane.b32.xlu1 %v329_v44, %s419_s5 }
  0x46   :  { %204 = vrot.lane.b32.xlu0 %v203_v45, %s420_s0 }
  0x74   :  { %v8_v46 = vpop.permute.xlu0 %7   ;;  %v22_v47 = vpop.permute.xlu1 %21  }
  0x75   :  { %279 = vst.msk [vmem:[%s709_s1 + $0x23] sm:$0x1] %vm3_vm5, %v8_v46   ;;  %283 = vst.msk [vmem:[%s709_s1 + $0xf] sm:$0x1] %vm3_vm5, %v22_v47  }
  0x78   :  { %v15_v48 = vpop.permute.xlu0 %14   ;;  %v29_v49 = vpop.permute.xlu1 %28  }
  0x79   :  { %281 = vst.msk [vmem:[%s709_s1 + $0x1c] sm:$0x1] %vm3_vm5, %v15_v48   ;;  %285 = vst.msk [vmem:[%s709_s1 + $0x8] sm:$0x1] %vm3_vm5, %v29_v49  }
  0x7c   :  { %v35_v50 = vpop.permute.xlu0 %34   ;;  %v42_v51 = vpop.permute.xlu1 %41  }
  0x7d   :  { %286 = vst.msk [vmem:[%s709_s1 + $0x1] sm:$0x1] %vm3_vm5, %v35_v50   ;;  %288 = vst.msk [vmem:[%s709_s1 + $0x24] sm:$0x1] %vm3_vm5, %v42_v51  }
  0x80   :  { %v216_v52 = vpop.permute.xlu0 %215   ;;  %v230_v53 = vpop.permute.xlu1 %229  }
  0x81   :  { %334 = vst.msk [vmem:[%s709_s1 + $0x29] sm:$0x1] %vm217_vm6, %v216_v52  }
  0x82   :  { %338 = vst.msk [vmem:[%s709_s1 + $0x22] sm:$0x1] %vm231_vm7, %v230_v53  }
  0x83   :  { %335 = vst.msk [vmem:[%s709_s1 + $0x29] sm:$0x1] %vm220_vm8, %v216_v52  }
  0x84   :  { %339 = vst.msk [vmem:[%s709_s1 + $0x22] sm:$0x1] %vm234_vm9, %v230_v53   ;;  %v244_v54 = vpop.permute.xlu0 %243   ;;  %v258_v55 = vpop.permute.xlu1 %257  }
  0x85   :  { %342 = vst.msk [vmem:[%s709_s1 + $0x1b] sm:$0x1] %vm245_vm10, %v244_v54  }
  0x86   :  { %346 = vst.msk [vmem:[%s709_s1 + $0xe] sm:$0x1] %vm259_vm11, %v258_v55  }
  0x87   :  { %343 = vst.msk [vmem:[%s709_s1 + $0x1b] sm:$0x1] %vm248_vm12, %v244_v54  }
  0x88   :  { %347 = vst.msk [vmem:[%s709_s1 + $0xe] sm:$0x1] %vm262_vm13, %v258_v55   ;;  %v271_v56 = vpop.permute.xlu0 %270   ;;  %v49_v57 = vpop.permute.xlu1 %48  }
  0x89   :  { %349 = vst.msk [vmem:[%s709_s1 + $0x7] sm:$0x1] %vm272_vm14, %v271_v56  }
  0x8a   :  { %290 = vst.msk [vmem:[%s709_s1 + $0x1d] sm:$0x1] %vm3_vm5, %v49_v57  }
  0x8b   :  { %350 = vst.msk [vmem:[%s709_s1 + $0x7] sm:$0x1] %vm275_vm15, %v271_v56  }
  0x8c   :  { %v56_v58 = vpop.permute.xlu0 %55   ;;  %v63_v59 = vpop.permute.xlu1 %62  }
  0x8d   :  { %292 = vst.msk [vmem:[%s709_s1 + $0x10] sm:$0x1] %vm3_vm5, %v56_v58   ;;  %294 = vst.msk [vmem:[%s709_s1 + $0x9] sm:$0x1] %vm3_vm5, %v63_v59  }
  0x90   :  { %v69_v60 = vpop.permute.xlu0 %68   ;;  %v76_v61 = vpop.permute.xlu1 %75  }
  0x91   :  { %295 = vst.msk [vmem:[%s709_s1 + $0x2] sm:$0x1] %vm3_vm5, %v69_v60   ;;  %297 = vst.msk [vmem:[%s709_s1 + $0x25] sm:$0x1] %vm3_vm5, %v76_v61  }
  0x94   :  { %v83_v62 = vpop.permute.xlu0 %82   ;;  %v90_v63 = vpop.permute.xlu1 %89  }
  0x95   :  { %299 = vst.msk [vmem:[%s709_s1 + $0x1e] sm:$0x1] %vm3_vm5, %v83_v62   ;;  %301 = vst.msk [vmem:[%s709_s1 + $0x11] sm:$0x1] %vm3_vm5, %v90_v63  }
  0x98   :  { %v97_v0 = vpop.permute.xlu0 %96   ;;  %v103_v1 = vpop.permute.xlu1 %102  }
  0x99   :  { %303 = vst.msk [vmem:[%s709_s1 + $0xa] sm:$0x1] %vm3_vm5, %v97_v0   ;;  %304 = vst.msk [vmem:[%s709_s1 + $0x3] sm:$0x1] %vm3_vm5, %v103_v1  }
  0x9c   :  { %v110_v2 = vpop.permute.xlu0 %109   ;;  %v117_v3 = vpop.permute.xlu1 %116  }
  0x9d   :  { %306 = vst.msk [vmem:[%s709_s1 + $0x26] sm:$0x1] %vm3_vm5, %v110_v2   ;;  %308 = vst.msk [vmem:[%s709_s1 + $0x1f] sm:$0x1] %vm3_vm5, %v117_v3  }
  0xa0   :  { %v124_v4 = vpop.permute.xlu0 %123   ;;  %v131_v5 = vpop.permute.xlu1 %130  }
  0xa1   :  { %310 = vst.msk [vmem:[%s709_s1 + $0x18] sm:$0x1] %vm3_vm5, %v124_v4   ;;  %312 = vst.msk [vmem:[%s709_s1 + $0xb] sm:$0x1] %vm3_vm5, %v131_v5  }
  0xa4   :  { %v137_v6 = vpop.permute.xlu0 %136   ;;  %v144_v7 = vpop.permute.xlu1 %143  }
  0xa5   :  { %313 = vst.msk [vmem:[%s709_s1 + $0x4] sm:$0x1] %vm3_vm5, %v137_v6   ;;  %315 = vst.msk [vmem:[%s709_s1 + $0x27] sm:$0x1] %vm3_vm5, %v144_v7  }
  0xa8   :  { %v151_v8 = vpop.permute.xlu0 %150   ;;  %v158_v9 = vpop.permute.xlu1 %157  }
  0xa9   :  { %317 = vst.msk [vmem:[%s709_s1 + $0x20] sm:$0x1] %vm3_vm5, %v151_v8   ;;  %319 = vst.msk [vmem:[%s709_s1 + $0x19] sm:$0x1] %vm3_vm5, %v158_v9  }
  0xac   :  { %v165_v10 = vpop.permute.xlu0 %164   ;;  %v171_v11 = vpop.permute.xlu1 %170  }
  0xad   :  { %321 = vst.msk [vmem:[%s709_s1 + $0xc] sm:$0x1] %vm3_vm5, %v165_v10   ;;  %322 = vst.msk [vmem:[%s709_s1 + $0x5] sm:$0x1] %vm3_vm5, %v171_v11  }
  0xb0   :  { %v178_v12 = vpop.permute.xlu0 %177   ;;  %v185_v13 = vpop.permute.xlu1 %184  }
  0xb1   :  { %324 = vst.msk [vmem:[%s709_s1 + $0x28] sm:$0x1] %vm3_vm5, %v178_v12   ;;  %326 = vst.msk [vmem:[%s709_s1 + $0x21] sm:$0x1] %vm3_vm5, %v185_v13  }
  0xb4   :  { %v192_v14 = vpop.permute.xlu0 %191   ;;  %v199_v15 = vpop.permute.xlu1 %198  }
  0xb5   :  { %328 = vst.msk [vmem:[%s709_s1 + $0x1a] sm:$0x1] %vm3_vm5, %v192_v14   ;;  %330 = vst.msk [vmem:[%s709_s1 + $0xd] sm:$0x1] %vm3_vm5, %v199_v15  }
  0xb8   :  { %v205_v16 = vpop.permute.xlu0 %204  }
  0xb9   :  { %331 = vst.msk [vmem:[%s709_s1 + $0x6] sm:$0x1] %vm3_vm5, %v205_v16  }

// kernel: decoder_forward.1
= control target key start
LH: loop header
LB: loop body
LE: loop exit
PB: predicated region body
PF: predicated region fallthrough
CT: control target
= control target key end

     0   :  { %s3184_s19 = smov 127   ;;  %s3185_s22 = smov 126   ;;  %v31_v5 = vlaneseq  ;;  %v3190_v6 = vmov 0.0   ;;  %v3192_v8 = vmov 1.0   ;;  %vm78_vm1 = vcmask 1039360   ;;  %s4278_s0 = inlined_call_operand.vmem [shape: f32[1,8,1024], index: 0, kind: input, shape index: {}]   ;;  %s4279_s3 = inlined_call_operand.vmem [shape: f32[4,8,80], index: 3, kind: input, shape index: {}]   ;;  %s4280_s1 = inlined_call_operand.vmem [shape: f32[1,768], index: 1, kind: input, shape index: {}, may-alias: {1,2}]   ;;  %s4281_s2 = inlined_call_operand.vmem [shape: f32[1,768], index: 2, kind: input, shape index: {}, may-alias: {1,2}]   ;;  %s4282_s4 = inlined_call_operand.vmem [shape: f32[1,1,768], index: 4, kind: output, shape index: {}]  }
   0x1   :  { %v3228_v0 = vld [vmem:[%s4278_s0 + $0x10] sm:$0xff]  ;;  %v3233_v1 = vld [vmem:[%s4278_s0 + $0x8] sm:$0xff]  ;;  %v3242_v2 = vld [vmem:[%s4278_s0 + $0x18] sm:$0xff]  ;;  %s3186_s23 = smov 110   ;;  %s3187_s24 = smov 109   ;;  %25 = vst [vmem:[#allocation3 + $0x1b0] sm:$0xff] %v3190_v6  ;;  %555 = vmatprep.mubr.f32.mxu0 %v3190_v6  ;;  %626 = vmatprep.mubr.f32.mxu1 %v3190_v6 }
   0x2   :  { %66 = vrot.lane.b32.xlu0 %v3228_v0, %s3184_s19  ;;  %64 = vrot.lane.b32.xlu1 %v3233_v1, %s3184_s19  ;;  %s3188_s25 = smov 108   ;;  %v3267_v3 = vld [vmem:[%s4278_s0 + $0x20] sm:$0xff]  ;;  %v3276_v4 = vld [vmem:[%s4278_s0 + $0x28] sm:$0xff]  ;;  %s3189_s30 = smov 92   ;;  %26 = vst [vmem:[#allocation3 + $0x1b8] sm:$0xff] %v3190_v6  ;;  %27 = vst [vmem:[#allocation3 + $0x1c0] sm:$0xff] %v3190_v6 }
   0x3   :  { %28 = vst [vmem:[#allocation3 + $0x1c8] sm:$0xff] %v3190_v6  ;;  %vm3291_vm0 = vcmp.lt.s32.totalorder %v31_v5, 768  ;;  %29 = vst [vmem:[#allocation3 + $0x1d0] sm:$0xff] %v3190_v6  ;;  %s3191_s5 = smov 91   ;;  %s3193_s6 = smov 90   ;;  %v3338_v9 = vld [vmem:[%s4278_s0 + $0x30] sm:$0xff] }
   0x4   :  { %30 = vst [vmem:[#allocation3 + $0x1d8] sm:$0xff] %v3190_v6  ;;  %36 = vst.msk [vmem:[#allocation3 + $0x1b0] ss:$8 sm:$0xf] %vm3291_vm0, %v3192_v8  ;;  %v56_v10 = vld [vmem:[%s4278_s0 + $0x38] sm:$0xff]  ;;  %vm125_vm2 = vcmask 1031168  }
   0x5   :  { %37 = vst.msk [vmem:[#allocation3 + $0x1b0] ss:$8 sm:$0x30] %vm3291_vm0, %v3192_v8  ;;  %vm172_vm3 = vcmask 900096   ;;  %vm219_vm4 = vcmask 891904   ;;  %vm266_vm5 = vcmask 883712  }
   0x6   :  { %68 = vrot.lane.b32.xlu0 %v3242_v2, %s3184_s19  ;;  %113 = vrot.lane.b32.xlu1 %v3228_v0, %s3185_s22  ;;  %vm313_vm6 = vcmask 752640   ;;  %vm360_vm7 = vcmask 744448   ;;  %vm407_vm8 = vcmask 736256   ;;  %vm487_vm9 = vcmask 654336   ;;  %s3194_s12 = smov 18   ;;  %s3195_s13 = smov 1  }
   0x7   :  { %s3196_s14 = smov 19   ;;  %s3197_s17 = smov 17   ;;  %vm1499_vm10 = vcmask 146432   ;;  %vm1452_vm11 = vcmask 154624   ;;  %vm1593_vm12 = vcmask 7168   ;;  %vm1546_vm13 = vcmask 138240  }
   0x8   :  { %s3198_s21 = smov 111   ;;  %vm1698_vm14 = vcmask 908288  }
   0xa   :  { %115 = vrot.lane.b32.xlu0 %v3242_v2, %s3185_s22  ;;  %160 = vrot.lane.b32.xlu1 %v3228_v0, %s3186_s23 }
   0xe   :  { %162 = vrot.lane.b32.xlu0 %v3242_v2, %s3186_s23  ;;  %111 = vrot.lane.b32.xlu1 %v3233_v1, %s3185_s22 }
  0x12   :  { %158 = vrot.lane.b32.xlu0 %v3233_v1, %s3186_s23  ;;  %207 = vrot.lane.b32.xlu1 %v3228_v0, %s3187_s24 }
  0x16   :  { %209 = vrot.lane.b32.xlu0 %v3242_v2, %s3187_s24  ;;  %254 = vrot.lane.b32.xlu1 %v3228_v0, %s3188_s25 }
  0x1a   :  { %256 = vrot.lane.b32.xlu0 %v3242_v2, %s3188_s25  ;;  %70 = vrot.lane.b32.xlu1 %v3267_v3, %s3184_s19 }
  0x1e   :  { %72 = vrot.lane.b32.xlu0 %v3276_v4, %s3184_s19  ;;  %205 = vrot.lane.b32.xlu1 %v3233_v1, %s3187_s24 }
  0x22   :  { %252 = vrot.lane.b32.xlu0 %v3233_v1, %s3188_s25  ;;  %301 = vrot.lane.b32.xlu1 %v3228_v0, %s3189_s30 }
  0x26   :  { %303 = vrot.lane.b32.xlu0 %v3242_v2, %s3189_s30  ;;  %348 = vrot.lane.b32.xlu1 %v3228_v0, %s3191_s5 }
  0x2a   :  { %350 = vrot.lane.b32.xlu0 %v3242_v2, %s3191_s5  ;;  %117 = vrot.lane.b32.xlu1 %v3267_v3, %s3185_s22 }
  0x2e   :  { %119 = vrot.lane.b32.xlu0 %v3276_v4, %s3185_s22  ;;  %164 = vrot.lane.b32.xlu1 %v3267_v3, %s3186_s23 }
  0x32   :  { %166 = vrot.lane.b32.xlu0 %v3276_v4, %s3186_s23  ;;  %299 = vrot.lane.b32.xlu1 %v3233_v1, %s3189_s30 }
  0x36   :  { %346 = vrot.lane.b32.xlu0 %v3233_v1, %s3191_s5  ;;  %395 = vrot.lane.b32.xlu1 %v3228_v0, %s3193_s6 }
  0x3a   :  { %397 = vrot.lane.b32.xlu0 %v3242_v2, %s3193_s6  ;;  %211 = vrot.lane.b32.xlu1 %v3267_v3, %s3187_s24 }
  0x3e   :  { %213 = vrot.lane.b32.xlu0 %v3276_v4, %s3187_s24  ;;  %258 = vrot.lane.b32.xlu1 %v3267_v3, %s3188_s25 }
  0x42   :  { %260 = vrot.lane.b32.xlu0 %v3276_v4, %s3188_s25  ;;  %393 = vrot.lane.b32.xlu1 %v3233_v1, %s3193_s6 }
  0x46   :  { %74 = vrot.lane.b32.xlu0 %v3338_v9, %s3184_s19  ;;  %76 = vrot.lane.b32.xlu1 %v56_v10, %s3184_s19 }
  0x4a   :  { %305 = vrot.lane.b32.xlu0 %v3267_v3, %s3189_s30  ;;  %307 = vrot.lane.b32.xlu1 %v3276_v4, %s3189_s30 }
  0x4e   :  { %352 = vrot.lane.b32.xlu0 %v3267_v3, %s3191_s5  ;;  %354 = vrot.lane.b32.xlu1 %v3276_v4, %s3191_s5 }
  0x52   :  { %121 = vrot.lane.b32.xlu0 %v3338_v9, %s3185_s22  ;;  %123 = vrot.lane.b32.xlu1 %v56_v10, %s3185_s22 }
  0x56   :  { %168 = vrot.lane.b32.xlu0 %v3338_v9, %s3186_s23  ;;  %170 = vrot.lane.b32.xlu1 %v56_v10, %s3186_s23 }
  0x5a   :  { %399 = vrot.lane.b32.xlu0 %v3267_v3, %s3193_s6  ;;  %401 = vrot.lane.b32.xlu1 %v3276_v4, %s3193_s6 }
  0x5e   :  { %215 = vrot.lane.b32.xlu0 %v3338_v9, %s3187_s24  ;;  %217 = vrot.lane.b32.xlu1 %v56_v10, %s3187_s24 }
  0x62   :  { %262 = vrot.lane.b32.xlu0 %v3338_v9, %s3188_s25  ;;  %264 = vrot.lane.b32.xlu1 %v56_v10, %s3188_s25 }
  0x66   :  { %309 = vrot.lane.b32.xlu0 %v3338_v9, %s3189_s30  ;;  %311 = vrot.lane.b32.xlu1 %v56_v10, %s3189_s30 }
  0x6a   :  { %356 = vrot.lane.b32.xlu0 %v3338_v9, %s3191_s5  ;;  %358 = vrot.lane.b32.xlu1 %v56_v10, %s3191_s5 }
  0x6e   :  { %403 = vrot.lane.b32.xlu0 %v3338_v9, %s3193_s6  ;;  %405 = vrot.lane.b32.xlu1 %v56_v10, %s3193_s6 }
  0x72   :  { %754 = vrot.lane.b32.xlu1 %v3190_v6, %s3184_s19 }
  0x74   :  { %v67_v11 = vpop.permute.xlu0 %66  ;;  %v65_v12 = vpop.permute.xlu1 %64 }
  0x75   :  { %v79_v13 = vsel %vm78_vm1, %v65_v12, %v67_v11  ;;  %v3431_v12 = vld [vmem:[#allocation3 + $0x1b8] sm:$0xff] }
  0x76   :  { %800 = vrot.lane.b32.xlu1 %v3190_v6, %s3185_s22  ;;  %v2906_v18 = vpack.c.bf16 %v79_v13, %v3233_v1 }
  0x78   :  { %v69_v14 = vpop.permute.xlu0 %68  ;;  %v114_v15 = vpop.permute.xlu1 %113 }
  0x79   :  { %v80_v16 = vsel %vm78_vm1, %v67_v11, %v69_v14 }
  0x7a   :  { %v2904_v17 = vpack.c.bf16 %v80_v16, %v3228_v0  ;;  %846 = vrot.lane.b32.xlu1 %v3190_v6, %s3186_s23 }
  0x7c   :  { %v116_v19 = vpop.permute.xlu0 %115  ;;  %v161_v20 = vpop.permute.xlu1 %160  ;;  %2905 = vmatprep.subr.bf16.mxu0 %v2904_v17 }
  0x7d   :  { %2907 = vmatpush1.bf16.msra.mxu0 %v2906_v18  ;;  %v127_v23 = vsel %vm125_vm2, %v114_v15, %v116_v19 }
  0x7e   :  { %892 = vrot.lane.b32.xlu1 %v3190_v6, %s3187_s24 }
  0x80   :  { %v163_v21 = vpop.permute.xlu0 %162  ;;  %v112_v22 = vpop.permute.xlu1 %111 }
  0x81   :  { %v174_v24 = vsel %vm172_vm3, %v161_v20, %v163_v21  ;;  %v126_v28 = vsel %vm125_vm2, %v112_v22, %v114_v15 }
  0x82   :  { %v2908_v25 = vpack.c.bf16 %v174_v24, %v127_v23  ;;  %938 = vrot.lane.b32.xlu1 %v3190_v6, %s3188_s25 }
  0x84   :  { %v159_v26 = vpop.permute.xlu0 %158  ;;  %v208_v27 = vpop.permute.xlu1 %207  ;;  %2909 = vmatprep.subr.bf16.mxu0 %v2908_v25 }
  0x85   :  { %v173_v29 = vsel %vm172_vm3, %v159_v26, %v161_v20 }
  0x86   :  { %v2910_v30 = vpack.c.bf16 %v173_v29, %v126_v28 }
  0x88   :  { %v3397_v31 = vpop.permute.xlu0 %209  ;;  %v255_v32 = vpop.permute.xlu1 %254  ;;  %2911 = vmatpush1.bf16.msra.mxu0 %v2910_v30 }
  0x89   :  { %v221_v35 = vsel %vm219_vm4, %v208_v27, %v3397_v31 }
  0x8c   :  { %v257_v33 = vpop.permute.xlu0 %256  ;;  %v71_v34 = vpop.permute.xlu1 %70 }
  0x8d   :  { %v268_v36 = vsel %vm266_vm5, %v255_v32, %v257_v33  ;;  %v81_v38 = vsel %vm78_vm1, %v69_v14, %v71_v34 }
  0x8e   :  { %v2912_v37 = vpack.c.bf16 %v268_v36, %v221_v35  ;;  %v2926_v43 = vpack.c.bf16 %v81_v38, %v3242_v2 }
  0x90   :  { %v3403_v39 = vpop.permute.xlu0 %72  ;;  %v206_v40 = vpop.permute.xlu1 %205  ;;  %2913 = vmatprep.subr.bf16.mxu0 %v2912_v37 }
  0x91   :  { %v82_v41 = vsel %vm78_vm1, %v71_v34, %v3403_v39  ;;  %v220_v46 = vsel %vm219_vm4, %v206_v40, %v208_v27 }
  0x92   :  { %v2924_v42 = vpack.c.bf16 %v82_v41, %v3267_v3 }
  0x94   :  { %v253_v44 = vpop.permute.xlu0 %252  ;;  %v302_v45 = vpop.permute.xlu1 %301  ;;  %2925 = vmatprep.subr.bf16.mxu1 %v2924_v42 }
  0x95   :  { %v267_v47 = vsel %vm266_vm5, %v253_v44, %v255_v32  ;;  %2927 = vmatpush1.bf16.msra.mxu1 %v2926_v43 }
  0x96   :  { %v2914_v48 = vpack.c.bf16 %v267_v47, %v220_v46 }
  0x98   :  { %v3411_v49 = vpop.permute.xlu0 %303  ;;  %v349_v50 = vpop.permute.xlu1 %348  ;;  %2915 = vmatpush1.bf16.msra.mxu0 %v2914_v48 }
  0x99   :  { %v315_v53 = vsel %vm313_vm6, %v302_v45, %v3411_v49 }
  0x9c   :  { %v3413_v51 = vpop.permute.xlu0 %350  ;;  %v118_v52 = vpop.permute.xlu1 %117 }
  0x9d   :  { %v362_v54 = vsel %vm360_vm7, %v349_v50, %v3413_v51  ;;  %v128_v63 = vsel %vm125_vm2, %v116_v19, %v118_v52  ;;  %v3440_v19 = vld [vmem:[#allocation3 + $0x1b0] sm:$0xff] }
  0x9e   :  { %v2916_v55 = vpack.c.bf16 %v362_v54, %v315_v53 }
  0xa0   :  { %v3419_v56 = vpop.permute.xlu0 %119  ;;  %v165_v57 = vpop.permute.xlu1 %164  ;;  %2917 = vmatprep.subr.bf16.mxu0 %v2916_v55  ;;  %v3478_v55 = vld [vmem:[#allocation3 + $0x1c8] sm:$0xff] }
  0xa1   :  { %v175_v58 = vsel %vm172_vm3, %v163_v21, %v165_v57  ;;  %v129_v61 = vsel %vm125_vm2, %v118_v52, %v3419_v56 }
  0xa2   :  { %v2930_v1 = vpack.c.bf16 %v175_v58, %v128_v63 }
  0xa4   :  { %v3422_v59 = vpop.permute.xlu0 %166  ;;  %v300_v60 = vpop.permute.xlu1 %299 }
  0xa5   :  { %v176_v62 = vsel %vm172_vm3, %v165_v57, %v3422_v59  ;;  %v314_v8 = vsel %vm313_vm6, %v300_v60, %v302_v45  ;;  %v3480_v57 = vld [vmem:[#allocation3 + $0x1c0] sm:$0xff] }
  0xa6   :  { %v2928_v0 = vpack.c.bf16 %v176_v62, %v129_v61 }
  0xa8   :  { %v347_v2 = vpop.permute.xlu0 %346  ;;  %v396_v3 = vpop.permute.xlu1 %395  ;;  %2929 = vmatprep.subr.bf16.mxu1 %v2928_v0 }
  0xa9   :  { %v361_v10 = vsel %vm360_vm7, %v347_v2, %v349_v50  ;;  %2931 = vmatpush1.bf16.msra.mxu1 %v2930_v1 }
  0xaa   :  { %v2918_v11 = vpack.c.bf16 %v361_v10, %v314_v8 }
  0xac   :  { %v3433_v13 = vpop.permute.xlu0 %397  ;;  %v212_v14 = vpop.permute.xlu1 %211  ;;  %2919 = vmatpush1.bf16.msra.mxu0 %v2918_v11 }
  0xad   :  { %v409_v15 = vsel %vm407_vm8, %v396_v3, %v3433_v13  ;;  %v222_v26 = vsel %vm219_vm4, %v3397_v31, %v212_v14 }
  0xae   :  { %v2920_v16 = vpack.c.bf16 %v3431_v12, %v409_v15 }
  0xb0   :  { %v3438_v17 = vpop.permute.xlu0 %213  ;;  %v259_v18 = vpop.permute.xlu1 %258  ;;  %2921 = vmatprep.subr.bf16.mxu0 %v2920_v16 }
  0xb1   :  { %v269_v20 = vsel %vm266_vm5, %v257_v33, %v259_v18  ;;  %v223_v23 = vsel %vm219_vm4, %v212_v14, %v3438_v17  ;;  %v3456_v33 = vld [vmem:[%s4279_s3] sm:$0xff] }
  0xb2   :  { %v2934_v29 = vpack.c.bf16 %v269_v20, %v222_v26  ;;  %v3500_v26 = vld [vmem:[#allocation3 + $0x1d8] sm:$0xff] }
  0xb4   :  { %v3443_v21 = vpop.permute.xlu0 %260  ;;  %v394_v22 = vpop.permute.xlu1 %393 }
  0xb5   :  { %v270_v24 = vsel %vm266_vm5, %v259_v18, %v3443_v21  ;;  %v408_v25 = vsel %vm407_vm8, %v394_v22, %v396_v3 }
  0xb6   :  { %v2922_v27 = vpack.c.bf16 %v3440_v19, %v408_v25  ;;  %v2932_v28 = vpack.c.bf16 %v270_v24, %v223_v23 }
  0xb8   :  { %v75_v30 = vpop.permute.xlu0 %74  ;;  %v77_v32 = vpop.permute.xlu1 %76  ;;  %2923 = vmatpush1.bf16.msra.mxu0 %v2922_v27  ;;  %2933 = vmatprep.subr.bf16.mxu1 %v2932_v28  ;;  %v3502_v27 = vld [vmem:[#allocation3 + $0x1d0] sm:$0xff] }
  0xb9   :  { %v83_v34 = vsel %vm78_vm1, %v3403_v39, %v75_v30  ;;  %v84_v35 = vsel %vm78_vm1, %v75_v30, %v77_v32  ;;  %2935 = vmatpush1.bf16.msra.mxu1 %v2934_v29 }
  0xba   :  { %v2944_v31 = vpack.c.bf16 %v84_v35, %v3338_v9  ;;  %v2946_v36 = vpack.c.bf16 %v83_v34, %v3276_v4 }
  0xbb   :  { %2883 = vmatmul.mubr.msk.f32.vlgmr.msra.gmra.mrb[0].mxu0 %vm487_vm9, %v3456_v33 }
  0xbc   :  { %v306_v37 = vpop.permute.xlu0 %305  ;;  %v308_v38 = vpop.permute.xlu1 %307  ;;  %2945 = vmatprep.subr.bf16.mxu0 %v2944_v31  ;;  %697 = vmatprep.mubr.f32.mxu0 %v3190_v6 }
  0xbd   :  { %2947 = vmatpush1.bf16.msra.mxu0 %v2946_v36  ;;  %v316_v39 = vsel %vm313_vm6, %v3411_v49, %v306_v37  ;;  %v317_v42 = vsel %vm313_vm6, %v306_v37, %v308_v38 }
  0xc0   :  { %v353_v40 = vpop.permute.xlu0 %352  ;;  %v355_v41 = vpop.permute.xlu1 %354 }
  0xc1   :  { %v363_v9 = vsel %vm360_vm7, %v3413_v51, %v353_v40  ;;  %v364_v4 = vsel %vm360_vm7, %v353_v40, %v355_v41 }
  0xc2   :  { %v2936_v43 = vpack.c.bf16 %v364_v4, %v317_v42  ;;  %v2938_v44 = vpack.c.bf16 %v363_v9, %v316_v39 }
  0xc4   :  { %v122_v45 = vpop.permute.xlu0 %121  ;;  %v124_v46 = vpop.permute.xlu1 %123  ;;  %2937 = vmatprep.subr.bf16.mxu1 %v2936_v43 }
  0xc5   :  { %2939 = vmatpush1.bf16.msra.mxu1 %v2938_v44  ;;  %v130_v50 = vsel %vm125_vm2, %v3419_v56, %v122_v45  ;;  %v131_v49 = vsel %vm125_vm2, %v122_v45, %v124_v46 }
  0xc8   :  { %v169_v47 = vpop.permute.xlu0 %168  ;;  %v171_v48 = vpop.permute.xlu1 %170 }
  0xc9   :  { %v177_v52 = vsel %vm172_vm3, %v3422_v59, %v169_v47  ;;  %v178_v51 = vsel %vm172_vm3, %v169_v47, %v171_v48 }
  0xca   :  { %v2948_v53 = vpack.c.bf16 %v178_v51, %v131_v49  ;;  %v2950_v54 = vpack.c.bf16 %v177_v52, %v130_v50 }
  0xcc   :  { %v400_v58 = vpop.permute.xlu0 %399  ;;  %v402_v60 = vpop.permute.xlu1 %401  ;;  %2949 = vmatprep.subr.bf16.mxu0 %v2948_v53 }
  0xcd   :  { %v410_v61 = vsel %vm407_vm8, %v3433_v13, %v400_v58  ;;  %v411_v56 = vsel %vm407_vm8, %v400_v58, %v402_v60  ;;  %2951 = vmatpush1.bf16.msra.mxu0 %v2950_v54 }
  0xce   :  { %v2940_v62 = vpack.c.bf16 %v3478_v55, %v411_v56  ;;  %v2942_v59 = vpack.c.bf16 %v3480_v57, %v410_v61 }
  0xd0   :  { %v216_v63 = vpop.permute.xlu0 %215  ;;  %v218_v0 = vpop.permute.xlu1 %217  ;;  %2941 = vmatprep.subr.bf16.mxu1 %v2940_v62 }
  0xd1   :  { %2943 = vmatpush1.bf16.msra.mxu1 %v2942_v59  ;;  %v225_v1 = vsel %vm219_vm4, %v216_v63, %v218_v0  ;;  %v224_v8 = vsel %vm219_vm4, %v3438_v17, %v216_v63 }
  0xd4   :  { %v263_v2 = vpop.permute.xlu0 %262  ;;  %v265_v3 = vpop.permute.xlu1 %264  ;;  %2884 = vmatmul.mubr.msk.f32.vlgmr.msra.gmra.mrb[0].mxu1 %vm487_vm9, %v3456_v33 }
  0xd5   :  { %v271_v10 = vsel %vm266_vm5, %v3443_v21, %v263_v2  ;;  %v272_v11 = vsel %vm266_vm5, %v263_v2, %v265_v3  ;;  %1225 = vmatprep.mubr.f32.mxu1 %v3190_v6 }
  0xd6   :  { %v2952_v13 = vpack.c.bf16 %v272_v11, %v225_v1  ;;  %v2954_v14 = vpack.c.bf16 %v271_v10, %v224_v8 }
  0xd8   :  { %v310_v15 = vpop.permute.xlu0 %309  ;;  %v312_v16 = vpop.permute.xlu1 %311  ;;  %2953 = vmatprep.subr.bf16.mxu0 %v2952_v13 }
  0xd9   :  { %2955 = vmatpush1.bf16.msra.mxu0 %v2954_v14  ;;  %v319_v18 = vsel %vm313_vm6, %v310_v15, %v312_v16  ;;  %v318_v23 = vsel %vm313_vm6, %v308_v38, %v310_v15 }
  0xdc   :  { %v357_v20 = vpop.permute.xlu0 %356  ;;  %v359_v22 = vpop.permute.xlu1 %358 }
  0xdd   :  { %v365_v17 = vsel %vm360_vm7, %v355_v41, %v357_v20  ;;  %v366_v21 = vsel %vm360_vm7, %v357_v20, %v359_v22 }
  0xde   :  { %v2956_v24 = vpack.c.bf16 %v366_v21, %v319_v18  ;;  %v2958_v25 = vpack.c.bf16 %v365_v17, %v318_v23 }
  0xe0   :  { %v404_v28 = vpop.permute.xlu0 %403  ;;  %v406_v29 = vpop.permute.xlu1 %405  ;;  %2957 = vmatprep.subr.bf16.mxu0 %v2956_v24 }
  0xe1   :  { %v412_v30 = vsel %vm407_vm8, %v402_v60, %v404_v28  ;;  %v413_v32 = vsel %vm407_vm8, %v404_v28, %v406_v29  ;;  %2959 = vmatpush1.bf16.msra.mxu0 %v2958_v25 }
  0xe2   :  { %v2960_v34 = vpack.c.bf16 %v3500_v26, %v413_v32  ;;  %v2962_v35 = vpack.c.bf16 %v3502_v27, %v412_v30 }
  0xe4   :  { %2961 = vmatprep.subr.bf16.mxu0 %v2960_v34  ;;  %v3611_v44 = vpop.permute.xlu1 %754 }
  0xe5   :  { %2963 = vmatpush1.bf16.msra.mxu0 %v2962_v35 }
  0xe8   :  { %2885 = vmatmul.mubr.msk.f32.vlgmr.msra.gmra.mrb[2].mxu0 %vm487_vm9, %v3456_v33  ;;  %v3619_v45 = vpop.permute.xlu1 %800 }
  0xe9   :  { %1296 = vmatprep.mubr.f32.mxu0 %v3190_v6 }
  0xec   :  { %v3625_v46 = vpop.permute.xlu1 %846 }
  0xf0   :  { %v3631_v47 = vpop.permute.xlu1 %892 }
  0xf4   :  { %v3639_v48 = vpop.permute.xlu1 %938 }
 0x18e   :  { %v557_v31 = vpop.f32.mrb[0].mxu0 }
 0x18f   :  { %v3511_v36 = vmax.f32 %v557_v31, 0.0  ;;  %v559_v37 = vpop.f32.mrb[1].mxu0 }
 0x190   :  { %v3537_v39 = vmax.f32 %v559_v37, 0.0 }
 0x191   :  { %742 = vrot.lane.b32.xlu0 %v3511_v36, %s3184_s19 }
 0x1a7   :  { %v628_v38 = vpop.f32.mrb[0].mxu1 }
 0x1a8   :  { %v3515_v40 = vmax.f32 %v628_v38, 0.0  ;;  %v630_v41 = vpop.f32.mrb[1].mxu1 }
 0x1a9   :  { %v3555_v9 = vmax.f32 %v630_v41, 0.0 }
 0x1aa   :  { %746 = vrot.lane.b32.xlu1 %v3515_v40, %s3184_s19  ;;  %792 = vrot.lane.b32.xlu0 %v3515_v40, %s3185_s22 }
 0x1ae   :  { %788 = vrot.lane.b32.xlu1 %v3511_v36, %s3185_s22  ;;  %838 = vrot.lane.b32.xlu0 %v3515_v40, %s3186_s23 }
 0x1b2   :  { %880 = vrot.lane.b32.xlu1 %v3511_v36, %s3187_s24  ;;  %834 = vrot.lane.b32.xlu0 %v3511_v36, %s3186_s23 }
 0x1b6   :  { %972 = vrot.lane.b32.xlu1 %v3511_v36, %s3189_s30  ;;  %884 = vrot.lane.b32.xlu0 %v3515_v40, %s3187_s24 }
 0x1ba   :  { %1064 = vrot.lane.b32.xlu1 %v3511_v36, %s3193_s6  ;;  %930 = vrot.lane.b32.xlu0 %v3515_v40, %s3188_s25 }
 0x1bb   :  { %v699_v33 = vpop.f32.mrb[2].mxu0 }
 0x1bc   :  { %v701_v42 = vpop.f32.mrb[3].mxu0  ;;  %v3581_v4 = vmax.f32 %v699_v33, 0.0 }
 0x1bd   :  { %v3599_v43 = vmax.f32 %v701_v42, 0.0 }
 0x1be   :  { %926 = vrot.lane.b32.xlu0 %v3511_v36, %s3188_s25  ;;  %790 = vrot.lane.b32.xlu1 %v3537_v39, %s3185_s22 }
 0x1c2   :  { %976 = vrot.lane.b32.xlu0 %v3515_v40, %s3189_s30  ;;  %836 = vrot.lane.b32.xlu1 %v3537_v39, %s3186_s23 }
 0x1c6   :  { %1022 = vrot.lane.b32.xlu0 %v3515_v40, %s3191_s5  ;;  %882 = vrot.lane.b32.xlu1 %v3537_v39, %s3187_s24 }
 0x1ca   :  { %1018 = vrot.lane.b32.xlu0 %v3511_v36, %s3191_s5  ;;  %928 = vrot.lane.b32.xlu1 %v3537_v39, %s3188_s25 }
 0x1ce   :  { %1068 = vrot.lane.b32.xlu0 %v3515_v40, %s3193_s6  ;;  %748 = vrot.lane.b32.xlu1 %v3555_v9, %s3184_s19 }
 0x1d2   :  { %974 = vrot.lane.b32.xlu1 %v3537_v39, %s3189_s30  ;;  %744 = vrot.lane.b32.xlu0 %v3537_v39, %s3184_s19 }
 0x1d6   :  { %1020 = vrot.lane.b32.xlu1 %v3537_v39, %s3191_s5  ;;  %886 = vrot.lane.b32.xlu0 %v3555_v9, %s3187_s24 }
 0x1da   :  { %794 = vrot.lane.b32.xlu1 %v3555_v9, %s3185_s22  ;;  %932 = vrot.lane.b32.xlu0 %v3555_v9, %s3188_s25 }
 0x1de   :  { %840 = vrot.lane.b32.xlu1 %v3555_v9, %s3186_s23  ;;  %978 = vrot.lane.b32.xlu0 %v3555_v9, %s3189_s30 }
 0x1e2   :  { %1066 = vrot.lane.b32.xlu1 %v3537_v39, %s3193_s6  ;;  %1024 = vrot.lane.b32.xlu0 %v3555_v9, %s3191_s5 }
 0x1e6   :  { %1070 = vrot.lane.b32.xlu0 %v3555_v9, %s3193_s6  ;;  %888 = vrot.lane.b32.xlu1 %v3581_v4, %s3187_s24 }
 0x1ea   :  { %934 = vrot.lane.b32.xlu1 %v3581_v4, %s3188_s25  ;;  %750 = vrot.lane.b32.xlu0 %v3581_v4, %s3184_s19 }
 0x1ee   :  { %980 = vrot.lane.b32.xlu1 %v3581_v4, %s3189_s30  ;;  %796 = vrot.lane.b32.xlu0 %v3581_v4, %s3185_s22 }
 0x1f2   :  { %1026 = vrot.lane.b32.xlu1 %v3581_v4, %s3191_s5  ;;  %842 = vrot.lane.b32.xlu0 %v3581_v4, %s3186_s23 }
 0x1f6   :  { %1072 = vrot.lane.b32.xlu1 %v3581_v4, %s3193_s6  ;;  %752 = vrot.lane.b32.xlu0 %v3599_v43, %s3184_s19 }
 0x1fa   :  { %798 = vrot.lane.b32.xlu0 %v3599_v43, %s3185_s22  ;;  %984 = vrot.lane.b32.xlu1 %v3190_v6, %s3189_s30 }
 0x1fe   :  { %844 = vrot.lane.b32.xlu0 %v3599_v43, %s3186_s23  ;;  %1030 = vrot.lane.b32.xlu1 %v3190_v6, %s3191_s5 }
 0x202   :  { %890 = vrot.lane.b32.xlu0 %v3599_v43, %s3187_s24  ;;  %1076 = vrot.lane.b32.xlu1 %v3190_v6, %s3193_s6 }
 0x203   :  { %v743_v50 = vpop.permute.xlu0 %742 }
 0x206   :  { %936 = vrot.lane.b32.xlu0 %v3599_v43, %s3188_s25  ;;  %1485 = vrot.lane.b32.xlu1 %v3190_v6, %s3194_s12 }
 0x20a   :  { %982 = vrot.lane.b32.xlu0 %v3599_v43, %s3189_s30  ;;  %1579 = vrot.lane.b32.xlu1 %v3190_v6, %s3195_s13 }
 0x20e   :  { %1028 = vrot.lane.b32.xlu0 %v3599_v43, %s3191_s5  ;;  %1650 = vrot.lane.b32.xlu1 %v3190_v6, %s3184_s19 }
 0x212   :  { %1074 = vrot.lane.b32.xlu0 %v3599_v43, %s3193_s6 }
 0x216   :  { %1438 = vrot.lane.b32.xlu0 %v3190_v6, %s3196_s14 }
 0x21a   :  { %1532 = vrot.lane.b32.xlu0 %v3190_v6, %s3197_s17 }
 0x21c   :  { %v3643_v49 = vpop.permute.xlu1 %746  ;;  %v3645_v52 = vpop.permute.xlu0 %792 }
 0x220   :  { %v789_v51 = vpop.permute.xlu1 %788  ;;  %v3647_v53 = vpop.permute.xlu0 %838 }
 0x224   :  { %v881_v54 = vpop.permute.xlu1 %880  ;;  %v835_v58 = vpop.permute.xlu0 %834 }
 0x228   :  { %v973_v60 = vpop.permute.xlu1 %972  ;;  %v3649_v61 = vpop.permute.xlu0 %884 }
 0x22c   :  { %v1065_v56 = vpop.permute.xlu1 %1064  ;;  %v3651_v62 = vpop.permute.xlu0 %930 }
 0x230   :  { %v927_v59 = vpop.permute.xlu0 %926  ;;  %v791_v63 = vpop.permute.xlu1 %790 }
 0x231   :  { %v803_v17 = vsel %vm125_vm2, %v791_v63, %v3645_v52  ;;  %v802_v30 = vsel %vm125_vm2, %v789_v51, %v791_v63 }
 0x234   :  { %v3653_v0 = vpop.permute.xlu0 %976  ;;  %v837_v1 = vpop.permute.xlu1 %836 }
 0x235   :  { %v849_v16 = vsel %vm172_vm3, %v837_v1, %v3647_v53  ;;  %v848_v21 = vsel %vm172_vm3, %v835_v58, %v837_v1 }
 0x236   :  { %v2968_v28 = vpack.c.bf16 %v849_v16, %v803_v17  ;;  %v2970_v34 = vpack.c.bf16 %v848_v21, %v802_v30 }
 0x238   :  { %v3655_v2 = vpop.permute.xlu0 %1022  ;;  %v883_v3 = vpop.permute.xlu1 %882 }
 0x239   :  { %v895_v32 = vsel %vm219_vm4, %v883_v3, %v3649_v61  ;;  %v894_v41 = vsel %vm219_vm4, %v881_v54, %v883_v3 }
 0x23c   :  { %v1019_v8 = vpop.permute.xlu0 %1018  ;;  %v929_v10 = vpop.permute.xlu1 %928 }
 0x23d   :  { %v941_v29 = vsel %vm266_vm5, %v929_v10, %v3651_v62  ;;  %v940_v35 = vsel %vm266_vm5, %v927_v59, %v929_v10 }
 0x23e   :  { %v2972_v37 = vpack.c.bf16 %v941_v29, %v895_v32 }
 0x240   :  { %v3657_v11 = vpop.permute.xlu0 %1068  ;;  %v749_v13 = vpop.permute.xlu1 %748 }
 0x244   :  { %v975_v14 = vpop.permute.xlu1 %974  ;;  %v745_v15 = vpop.permute.xlu0 %744 }
 0x245   :  { %v756_v18 = vsel %vm78_vm1, %v743_v50, %v745_v15  ;;  %v757_v20 = vsel %vm78_vm1, %v745_v15, %v3643_v49  ;;  %v987_v33 = vsel %vm313_vm6, %v975_v14, %v3653_v0  ;;  %v986_v59 = vsel %vm313_vm6, %v973_v60, %v975_v14  ;;  %v3696_v60 = vld [vmem:[%s4279_s3 + $0x8] sm:$0xff] }
 0x246   :  { %v2964_v22 = vpack.c.bf16 %v757_v20, %v3537_v39  ;;  %v2966_v23 = vpack.c.bf16 %v756_v18, %v3511_v36  ;;  %v2974_v39 = vpack.c.bf16 %v940_v35, %v894_v41 }
 0x248   :  { %v1021_v24 = vpop.permute.xlu1 %1020  ;;  %v3669_v25 = vpop.permute.xlu0 %886  ;;  %2965 = vmatprep.subr.bf16.mxu1 %v2964_v22 }
 0x249   :  { %2967 = vmatpush1.bf16.msra.mxu1 %v2966_v23  ;;  %v1033_v38 = vsel %vm360_vm7, %v1021_v24, %v3655_v2  ;;  %v1032_v42 = vsel %vm360_vm7, %v1019_v8, %v1021_v24 }
 0x24a   :  { %2969 = vmatprep.subr.bf16.mxu1 %v2968_v28  ;;  %v2976_v58 = vpack.c.bf16 %v1033_v38, %v987_v33  ;;  %v2978_v63 = vpack.c.bf16 %v1032_v42, %v986_v59 }
 0x24c   :  { %v795_v31 = vpop.permute.xlu1 %794  ;;  %v933_v36 = vpop.permute.xlu0 %932 }
 0x24d   :  { %2971 = vmatpush1.bf16.msra.mxu1 %v2970_v34 }
 0x24e   :  { %2973 = vmatprep.subr.bf16.mxu1 %v2972_v37 }
 0x250   :  { %v841_v50 = vpop.permute.xlu1 %840  ;;  %v3683_v51 = vpop.permute.xlu0 %978 }
 0x251   :  { %2975 = vmatpush1.bf16.msra.mxu1 %v2974_v39 }
 0x252   :  { %2977 = vmatprep.subr.bf16.mxu1 %v2976_v58 }
 0x254   :  { %v1067_v1 = vpop.permute.xlu1 %1066  ;;  %v1025_v10 = vpop.permute.xlu0 %1024 }
 0x255   :  { %v1078_v54 = vsel %vm407_vm8, %v1065_v56, %v1067_v1  ;;  %v1079_v3 = vsel %vm407_vm8, %v1067_v1, %v3657_v11  ;;  %2979 = vmatpush1.bf16.msra.mxu1 %v2978_v63  ;;  %v758_v56 = vsel %vm78_vm1, %v3643_v49, %v749_v13  ;;  %v850_v49 = vsel %vm172_vm3, %v3647_v53, %v841_v50 }
 0x256   :  { %v2980_v15 = vpack.c.bf16 %v3431_v12, %v1079_v3  ;;  %v2982_v8 = vpack.c.bf16 %v3440_v19, %v1078_v54  ;;  %v2986_v22 = vpack.c.bf16 %v758_v56, %v3515_v40  ;;  %v804_v40 = vsel %vm125_vm2, %v3645_v52, %v795_v31 }
 0x257   :  { %v2990_v32 = vpack.c.bf16 %v850_v49, %v804_v40  ;;  %v942_v53 = vsel %vm266_vm5, %v3651_v62, %v933_v36  ;;  %v1034_v42 = vsel %vm360_vm7, %v3655_v2, %v1025_v10 }
 0x258   :  { %v1071_v16 = vpop.permute.xlu0 %1070  ;;  %v3691_v18 = vpop.permute.xlu1 %888  ;;  %2981 = vmatprep.subr.bf16.mxu1 %v2980_v15 }
 0x259   :  { %2983 = vmatpush1.bf16.msra.mxu1 %v2982_v8  ;;  %v897_v30 = vsel %vm219_vm4, %v3669_v25, %v3691_v18 }
 0x25c   :  { %v3700_v14 = vpop.permute.xlu1 %934  ;;  %v751_v20 = vpop.permute.xlu0 %750  ;;  %2887 = vmatmul.mubr.msk.f32.vlgmr.msra.gmra.mrb[2].mxu1 %vm487_vm9, %v3696_v60 }
 0x25d   :  { %v759_v12 = vsel %vm78_vm1, %v749_v13, %v751_v20  ;;  %1367 = vmatprep.mubr.f32.mxu1 %v3190_v6  ;;  %v943_v13 = vsel %vm266_vm5, %v933_v36, %v3700_v14 }
 0x25e   :  { %v2984_v19 = vpack.c.bf16 %v759_v12, %v3555_v9  ;;  %v2992_v35 = vpack.c.bf16 %v943_v13, %v897_v30 }
 0x260   :  { %v3708_v23 = vpop.permute.xlu1 %980  ;;  %v797_v17 = vpop.permute.xlu0 %796  ;;  %2985 = vmatprep.subr.bf16.mxu0 %v2984_v19 }
 0x261   :  { %2987 = vmatpush1.bf16.msra.mxu0 %v2986_v22  ;;  %v805_v28 = vsel %vm125_vm2, %v795_v31, %v797_v17  ;;  %v896_v31 = vsel %vm219_vm4, %v3649_v61, %v3669_v25  ;;  %v989_v33 = vsel %vm313_vm6, %v3683_v51, %v3708_v23  ;;  %v1080_v61 = vsel %vm407_vm8, %v3657_v11, %v1071_v16 }
 0x262   :  { %v2994_v39 = vpack.c.bf16 %v942_v53, %v896_v31  ;;  %v3002_v54 = vpack.c.bf16 %v3480_v57, %v1080_v61 }
 0x264   :  { %v3712_v21 = vpop.permute.xlu1 %1026  ;;  %v843_v24 = vpop.permute.xlu0 %842 }
 0x265   :  { %v851_v9 = vsel %vm172_vm3, %v841_v50, %v843_v24  ;;  %v1035_v37 = vsel %vm360_vm7, %v1025_v10, %v3712_v21 }
 0x266   :  { %v2988_v29 = vpack.c.bf16 %v851_v9, %v805_v28  ;;  %v2996_v50 = vpack.c.bf16 %v1035_v37, %v989_v33 }
 0x268   :  { %v753_v34 = vpop.permute.xlu0 %752  ;;  %2989 = vmatprep.subr.bf16.mxu0 %v2988_v29  ;;  %v1073_v41 = vpop.permute.xlu1 %1072 }
 0x269   :  { %v760_v38 = vsel %vm78_vm1, %v751_v20, %v753_v34  ;;  %v761_v52 = vsel %vm78_vm1, %v753_v34, %v3611_v44  ;;  %2991 = vmatpush1.bf16.msra.mxu0 %v2990_v32  ;;  %v1081_v58 = vsel %vm407_vm8, %v1071_v16, %v1073_v41 }
 0x26a   :  { %2993 = vmatprep.subr.bf16.mxu0 %v2992_v35  ;;  %v3004_v62 = vpack.c.bf16 %v761_v52, %v3599_v43  ;;  %v3006_v36 = vpack.c.bf16 %v760_v38, %v3581_v4  ;;  %v988_v43 = vsel %vm313_vm6, %v3653_v0, %v3683_v51  ;;  %v3000_v59 = vpack.c.bf16 %v3478_v55, %v1081_v58 }
 0x26b   :  { %v2998_v4 = vpack.c.bf16 %v1034_v42, %v988_v43 }
 0x26c   :  { %v799_v44 = vpop.permute.xlu0 %798  ;;  %3005 = vmatprep.subr.bf16.mxu1 %v3004_v62  ;;  %v985_v55 = vpop.permute.xlu1 %984 }
 0x26d   :  { %2995 = vmatpush1.bf16.msra.mxu0 %v2994_v39  ;;  %3007 = vmatpush1.bf16.msra.mxu1 %v3006_v36  ;;  %v806_v2 = vsel %vm125_vm2, %v797_v17, %v799_v44  ;;  %v807_v63 = vsel %vm125_vm2, %v799_v44, %v3619_v45 }
 0x26e   :  { %2997 = vmatprep.subr.bf16.mxu0 %v2996_v50 }
 0x270   :  { %v845_v25 = vpop.permute.xlu0 %844  ;;  %v1031_v20 = vpop.permute.xlu1 %1030 }
 0x271   :  { %v852_v1 = vsel %vm172_vm3, %v843_v24, %v845_v25  ;;  %v853_v10 = vsel %vm172_vm3, %v845_v25, %v3625_v46  ;;  %2999 = vmatpush1.bf16.msra.mxu0 %v2998_v4 }
 0x272   :  { %3001 = vmatprep.subr.bf16.mxu0 %v3000_v59  ;;  %v3008_v0 = vpack.c.bf16 %v853_v10, %v807_v63  ;;  %v3010_v51 = vpack.c.bf16 %v852_v1, %v806_v2 }
 0x274   :  { %v891_v11 = vpop.permute.xlu0 %890  ;;  %3009 = vmatprep.subr.bf16.mxu1 %v3008_v0 }
 0x275   :  { %3003 = vmatpush1.bf16.msra.mxu0 %v3002_v54  ;;  %3011 = vmatpush1.bf16.msra.mxu1 %v3010_v51  ;;  %v898_v45 = vsel %vm219_vm4, %v3691_v18, %v891_v11  ;;  %v899_v46 = vsel %vm219_vm4, %v891_v11, %v3631_v47 }
 0x278   :  { %v937_v3 = vpop.permute.xlu0 %936  ;;  %2888 = vmatmul.mubr.msk.f32.vlgmr.msra.gmra.mrb[4].mxu0 %vm487_vm9, %v3696_v60 }
 0x279   :  { %v944_v15 = vsel %vm266_vm5, %v3700_v14, %v937_v3  ;;  %v945_v57 = vsel %vm266_vm5, %v937_v3, %v3639_v48  ;;  %1938 = vmatprep.mubr.f32.mxu0 %v3190_v6  ;;  %v1077_v48 = vpop.permute.xlu1 %1076 }
 0x27a   :  { %v3012_v8 = vpack.c.bf16 %v945_v57, %v899_v46  ;;  %v3014_v16 = vpack.c.bf16 %v944_v15, %v898_v45 }
 0x27c   :  { %v983_v56 = vpop.permute.xlu0 %982  ;;  %3013 = vmatprep.subr.bf16.mxu1 %v3012_v8 }
 0x27d   :  { %3015 = vmatpush1.bf16.msra.mxu1 %v3014_v16  ;;  %v990_v18 = vsel %vm313_vm6, %v3708_v23, %v983_v56  ;;  %v991_v47 = vsel %vm313_vm6, %v983_v56, %v985_v55  ;;  %v1486_v63 = vpop.permute.xlu1 %1485 }
 0x280   :  { %v1029_v12 = vpop.permute.xlu0 %1028 }
 0x281   :  { %v1036_v14 = vsel %vm360_vm7, %v3712_v21, %v1029_v12  ;;  %v1037_v19 = vsel %vm360_vm7, %v1029_v12, %v1031_v20  ;;  %v3781_v21 = vshrl.u32 %v31_v5, 7  ;;  %v1580_v1 = vpop.permute.xlu1 %1579 }
 0x282   :  { %v3016_v22 = vpack.c.bf16 %v1037_v19, %v991_v47  ;;  %v3018_v17 = vpack.c.bf16 %v1036_v14, %v990_v18 }
 0x283   :  { %v1384_v9 = vsub.s32 0, %v3781_v21  ;;  %v1388_v32 = vsub.s32 1, %v3781_v21  ;;  %v1392_v35 = vsub.s32 2, %v3781_v21  ;;  %v1396_v62 = vsub.s32 3, %v3781_v21 }
 0x284   :  { %v1075_v49 = vpop.permute.xlu0 %1074  ;;  %3017 = vmatprep.subr.bf16.mxu1 %v3016_v22  ;;  %v1404_v36 = vsub.s32 5, %v3781_v21  ;;  %v1400_v50 = vsub.s32 4, %v3781_v21 }
 0x285   :  { %v1082_v24 = vsel %vm407_vm8, %v1073_v41, %v1075_v49  ;;  %v1083_v13 = vsel %vm407_vm8, %v1075_v49, %v1077_v48  ;;  %3019 = vmatpush1.bf16.msra.mxu1 %v3018_v17  ;;  %v3924_v0 = vpop.permute.xlu1 %1650 }
 0x286   :  { %v3020_v28 = vpack.c.bf16 %v3500_v26, %v1083_v13  ;;  %v3022_v23 = vpack.c.bf16 %v3502_v27, %v1082_v24  ;;  %v1380_v26 = vld [vmem:[%s4280_s1] sm:$0x3f] }
 0x287   :  { %v1385_v27 = vrot.slane %v1380_v26, %v1384_v9  ;;  %v1389_v53 = vrot.slane %v1380_v26, %v1388_v32  ;;  %v1393_v37 = vrot.slane %v1380_v26, %v1392_v35  ;;  %v1397_v39 = vrot.slane %v1380_v26, %v1396_v62 }
 0x288   :  { %3021 = vmatprep.subr.bf16.mxu1 %v3020_v28  ;;  %v1405_v44 = vrot.slane %v1380_v26, %v1404_v36  ;;  %v1401_v59 = vrot.slane %v1380_v26, %v1400_v50  ;;  %v1439_v10 = vpop.permute.xlu0 %1438 }
 0x289   :  { %3023 = vmatpush1.bf16.msra.mxu1 %v3022_v23 }
 0x28c   :  { %2889 = vmatmul.mubr.msk.f32.vlgmr.msra.gmra.mrb[4].mxu1 %vm487_vm9, %v3696_v60  ;;  %v1533_v51 = vpop.permute.xlu0 %1532 }
 0x28d   :  { %2009 = vmatprep.mubr.f32.mxu1 %v3190_v6 }
 0x32f   :  { %v1227_v40 = vpop.f32.mrb[2].mxu1 }
 0x330   :  { %v1374_v60 = vmax.f32 %v1227_v40, 0.0  ;;  %v1229_v29 = vpop.f32.mrb[3].mxu1 }
 0x331   :  { %v1375_v5 = vmax.f32 %v1229_v29, 0.0 }
 0x332   :  { %v3789_v30 = vmul.f32 %v1385_v27, %v1374_v60 }
 0x333   :  { %v3802_v34 = vmul.f32 %v1389_v53, %v1375_v5 }
 0x334   :  { %1684 = vrot.lane.b32.xlu1 %v3789_v30, %s3198_s21  ;;  %1440 = vrot.lane.b32.xlu0 %v3789_v30, %s3196_s14 }
 0x338   :  { %1777 = vrot.lane.b32.xlu1 %v3789_v30, %s3187_s24  ;;  %1487 = vrot.lane.b32.xlu0 %v3789_v30, %s3194_s12 }
 0x33c   :  { %1442 = vrot.lane.b32.xlu1 %v3802_v34, %s3196_s14  ;;  %1534 = vrot.lane.b32.xlu0 %v3789_v30, %s3197_s17 }
 0x340   :  { %1489 = vrot.lane.b32.xlu1 %v3802_v34, %s3194_s12  ;;  %1581 = vrot.lane.b32.xlu0 %v3789_v30, %s3195_s13 }
 0x344   :  { %1536 = vrot.lane.b32.xlu1 %v3802_v34, %s3197_s17  ;;  %1638 = vrot.lane.b32.xlu0 %v3789_v30, %s3184_s19 }
 0x348   :  { %1583 = vrot.lane.b32.xlu1 %v3802_v34, %s3195_s13  ;;  %1731 = vrot.lane.b32.xlu0 %v3789_v30, %s3186_s23 }
 0x34b   :  { %v1298_v38 = vpop.f32.mrb[4].mxu0 }
 0x34c   :  { %v1376_v52 = vmax.f32 %v1298_v38, 0.0  ;;  %1686 = vrot.lane.b32.xlu1 %v3802_v34, %s3198_s21  ;;  %v1300_v31 = vpop.f32.mrb[5].mxu0  ;;  %1640 = vrot.lane.b32.xlu0 %v3802_v34, %s3184_s19 }
 0x34d   :  { %v1377_v33 = vmax.f32 %v1300_v31, 0.0 }
 0x34e   :  { %v3827_v41 = vmul.f32 %v1393_v37, %v1376_v52 }
 0x34f   :  { %v3856_v4 = vmul.f32 %v1397_v39, %v1377_v33 }
 0x350   :  { %1733 = vrot.lane.b32.xlu1 %v3802_v34, %s3186_s23  ;;  %1444 = vrot.lane.b32.xlu0 %v3827_v41, %s3196_s14 }
 0x354   :  { %1779 = vrot.lane.b32.xlu1 %v3802_v34, %s3187_s24  ;;  %1491 = vrot.lane.b32.xlu0 %v3827_v41, %s3194_s12 }
 0x358   :  { %1642 = vrot.lane.b32.xlu1 %v3827_v41, %s3184_s19  ;;  %1688 = vrot.lane.b32.xlu0 %v3827_v41, %s3198_s21 }
 0x35c   :  { %1538 = vrot.lane.b32.xlu1 %v3827_v41, %s3197_s17  ;;  %1735 = vrot.lane.b32.xlu0 %v3827_v41, %s3186_s23 }
 0x35f   :  { %v1369_v42 = vpop.f32.mrb[4].mxu1 }
 0x360   :  { %1585 = vrot.lane.b32.xlu1 %v3827_v41, %s3195_s13  ;;  %1781 = vrot.lane.b32.xlu0 %v3827_v41, %s3187_s24  ;;  %v1371_v58 = vpop.f32.mrb[5].mxu1  ;;  %v1378_v25 = vmax.f32 %v1369_v42, 0.0 }
 0x361   :  { %v1379_v43 = vmax.f32 %v1371_v58, 0.0 }
 0x362   :  { %v3866_v2 = vmul.f32 %v1401_v59, %v1378_v25 }
 0x363   :  { %v3858_v61 = vmul.f32 %v1405_v44, %v1379_v43 }
 0x364   :  { %1446 = vrot.lane.b32.xlu1 %v3856_v4, %s3196_s14  ;;  %1540 = vrot.lane.b32.xlu0 %v3856_v4, %s3197_s17 }
 0x368   :  { %1493 = vrot.lane.b32.xlu1 %v3856_v4, %s3194_s12  ;;  %1587 = vrot.lane.b32.xlu0 %v3856_v4, %s3195_s13 }
 0x36c   :  { %1644 = vrot.lane.b32.xlu1 %v3856_v4, %s3184_s19  ;;  %1646 = vrot.lane.b32.xlu0 %v3866_v2, %s3184_s19 }
 0x370   :  { %1692 = vrot.lane.b32.xlu1 %v3866_v2, %s3198_s21  ;;  %1448 = vrot.lane.b32.xlu0 %v3866_v2, %s3196_s14 }
 0x374   :  { %1739 = vrot.lane.b32.xlu1 %v3866_v2, %s3186_s23  ;;  %1495 = vrot.lane.b32.xlu0 %v3866_v2, %s3194_s12 }
 0x378   :  { %1785 = vrot.lane.b32.xlu1 %v3866_v2, %s3187_s24  ;;  %1690 = vrot.lane.b32.xlu0 %v3856_v4, %s3198_s21 }
 0x37c   :  { %1737 = vrot.lane.b32.xlu0 %v3856_v4, %s3186_s23  ;;  %1450 = vrot.lane.b32.xlu1 %v3858_v61, %s3196_s14 }
 0x380   :  { %1542 = vrot.lane.b32.xlu0 %v3866_v2, %s3197_s17  ;;  %1497 = vrot.lane.b32.xlu1 %v3858_v61, %s3194_s12 }
 0x384   :  { %1589 = vrot.lane.b32.xlu0 %v3866_v2, %s3195_s13  ;;  %1544 = vrot.lane.b32.xlu1 %v3858_v61, %s3197_s17 }
 0x388   :  { %1783 = vrot.lane.b32.xlu0 %v3856_v4, %s3187_s24  ;;  %1591 = vrot.lane.b32.xlu1 %v3858_v61, %s3195_s13 }
 0x38c   :  { %1648 = vrot.lane.b32.xlu0 %v3858_v61, %s3184_s19  ;;  %1696 = vrot.lane.b32.xlu1 %v3190_v6, %s3198_s21 }
 0x390   :  { %1694 = vrot.lane.b32.xlu0 %v3858_v61, %s3198_s21  ;;  %1743 = vrot.lane.b32.xlu1 %v3190_v6, %s3186_s23 }
 0x394   :  { %1741 = vrot.lane.b32.xlu0 %v3858_v61, %s3186_s23  ;;  %1789 = vrot.lane.b32.xlu1 %v3190_v6, %s3187_s24 }
 0x398   :  { %1787 = vrot.lane.b32.xlu0 %v3858_v61, %s3187_s24  ;;  %2197 = vrot.lane.b32.xlu1 %v3190_v6, %s3194_s12 }
 0x39c   :  { %2289 = vrot.lane.b32.xlu1 %v3190_v6, %s3195_s13  ;;  %2151 = vrot.lane.b32.xlu0 %v3190_v6, %s3196_s14 }
 0x3a0   :  { %2359 = vrot.lane.b32.xlu1 %v3190_v6, %s3184_s19  ;;  %2243 = vrot.lane.b32.xlu0 %v3190_v6, %s3197_s17 }
 0x3a4   :  { %2405 = vrot.lane.b32.xlu1 %v3190_v6, %s3198_s21 }
 0x3a6   :  { %v1685_v54 = vpop.permute.xlu1 %1684  ;;  %v1441_v11 = vpop.permute.xlu0 %1440 }
 0x3a7   :  { %v1453_v20 = vsel %vm1452_vm11, %v1439_v10, %v1441_v11  ;;  %v3962_v10 = vld [vmem:[#allocation3 + $0x1b0] sm:$0xff] }
 0x3aa   :  { %v1778_v55 = vpop.permute.xlu1 %1777  ;;  %v1488_v3 = vpop.permute.xlu0 %1487 }
 0x3ab   :  { %v1500_v15 = vsel %vm1499_vm10, %v1486_v63, %v1488_v3  ;;  %v3957_v63 = vld [vmem:[#allocation3 + $0x1b8] sm:$0xff] }
 0x3ac   :  { %v3026_v18 = vpack.c.bf16 %v1500_v15, %v1453_v20 }
 0x3ae   :  { %v3932_v45 = vpop.permute.xlu1 %1442  ;;  %v1535_v46 = vpop.permute.xlu0 %1534 }
 0x3af   :  { %v1454_v16 = vsel %vm1452_vm11, %v1441_v11, %v3932_v45  ;;  %v1547_v24 = vsel %vm1546_vm13, %v1533_v51, %v1535_v46 }
 0x3b2   :  { %v1490_v57 = vpop.permute.xlu1 %1489  ;;  %v1582_v8 = vpop.permute.xlu0 %1581 }
 0x3b3   :  { %v1501_v56 = vsel %vm1499_vm10, %v1488_v3, %v1490_v57  ;;  %v1594_v19 = vsel %vm1593_vm12, %v1580_v1, %v1582_v8 }
 0x3b4   :  { %v3024_v12 = vpack.c.bf16 %v1501_v56, %v1454_v16  ;;  %v3030_v28 = vpack.c.bf16 %v1594_v19, %v1547_v24 }
 0x3b6   :  { %v3939_v47 = vpop.permute.xlu1 %1536  ;;  %v1639_v14 = vpop.permute.xlu0 %1638  ;;  %3025 = vmatprep.subr.bf16.mxu0 %v3024_v12 }
 0x3b7   :  { %3027 = vmatpush1.bf16.msra.mxu0 %v3026_v18  ;;  %v1548_v17 = vsel %vm1546_vm13, %v1535_v46, %v3939_v47 }
 0x3ba   :  { %v1584_v48 = vpop.permute.xlu1 %1583  ;;  %v1732_v22 = vpop.permute.xlu0 %1731 }
 0x3bb   :  { %v1595_v49 = vsel %vm1593_vm12, %v1582_v8, %v1584_v48 }
 0x3bc   :  { %v3028_v13 = vpack.c.bf16 %v1595_v49, %v1548_v17 }
 0x3be   :  { %v1687_v23 = vpop.permute.xlu1 %1686  ;;  %v1641_v26 = vpop.permute.xlu0 %1640  ;;  %3029 = vmatprep.subr.bf16.mxu0 %v3028_v13 }
 0x3bf   :  { %3031 = vmatpush1.bf16.msra.mxu0 %v3030_v28  ;;  %v1652_v5 = vsel %vm78_vm1, %v1639_v14, %v1641_v26  ;;  %v1699_v43 = vsel %vm1698_vm14, %v1685_v54, %v1687_v23 }
 0x3c0   :  { %v3034_v31 = vpack.c.bf16 %v1652_v5, %v3789_v30 }
 0x3c2   :  { %v1734_v27 = vpop.permute.xlu1 %1733  ;;  %v1445_v40 = vpop.permute.xlu0 %1444 }
 0x3c3   :  { %v1745_v33 = vsel %vm172_vm3, %v1732_v22, %v1734_v27  ;;  %v1455_v18 = vsel %vm1452_vm11, %v3932_v45, %v1445_v40 }
 0x3c4   :  { %v3038_v59 = vpack.c.bf16 %v1745_v33, %v1699_v43 }
 0x3c6   :  { %v1780_v60 = vpop.permute.xlu1 %1779  ;;  %v1492_v29 = vpop.permute.xlu0 %1491 }
 0x3c7   :  { %v1502_v15 = vsel %vm1499_vm10, %v1490_v57, %v1492_v29 }
 0x3c8   :  { %v3046_v19 = vpack.c.bf16 %v1502_v15, %v1455_v18 }
 0x3ca   :  { %v1643_v53 = vpop.permute.xlu1 %1642  ;;  %v3947_v37 = vpop.permute.xlu0 %1688 }
 0x3cb   :  { %v1653_v38 = vsel %vm78_vm1, %v1641_v26, %v1643_v53  ;;  %v1700_v44 = vsel %vm1698_vm14, %v1687_v23, %v3947_v37 }
 0x3cc   :  { %v3032_v52 = vpack.c.bf16 %v1653_v38, %v3802_v34  ;;  %v1791_v34 = vsel %vm219_vm4, %v1778_v55, %v1780_v60  ;;  %v3973_v55 = vld [vmem:[%s4279_s3 + $0x10] sm:$0xff] }
 0x3cd   :  { %v3042_v54 = vpack.c.bf16 %v3962_v10, %v1791_v34 }
 0x3ce   :  { %v1539_v39 = vpop.permute.xlu1 %1538  ;;  %v1736_v42 = vpop.permute.xlu0 %1735  ;;  %3033 = vmatprep.subr.bf16.mxu0 %v3032_v52 }
 0x3cf   :  { %v1746_v58 = vsel %vm172_vm3, %v1734_v27, %v1736_v42  ;;  %3035 = vmatpush1.bf16.msra.mxu0 %v3034_v31  ;;  %v1549_v28 = vsel %vm1546_vm13, %v3939_v47, %v1539_v39 }
 0x3d0   :  { %v3036_v25 = vpack.c.bf16 %v1746_v58, %v1700_v44 }
 0x3d2   :  { %v1586_v30 = vpop.permute.xlu1 %1585  ;;  %v3960_v1 = vpop.permute.xlu0 %1781  ;;  %3037 = vmatprep.subr.bf16.mxu0 %v3036_v25 }
 0x3d3   :  { %v1792_v51 = vsel %vm219_vm4, %v1780_v60, %v3960_v1  ;;  %3039 = vmatpush1.bf16.msra.mxu0 %v3038_v59  ;;  %v1596_v22 = vsel %vm1593_vm12, %v1584_v48, %v1586_v30 }
 0x3d4   :  { %v3040_v11 = vpack.c.bf16 %v3957_v63, %v1792_v51  ;;  %v3050_v23 = vpack.c.bf16 %v1596_v22, %v1549_v28 }
 0x3d6   :  { %v1447_v3 = vpop.permute.xlu1 %1446  ;;  %v3968_v46 = vpop.permute.xlu0 %1540  ;;  %3041 = vmatprep.subr.bf16.mxu0 %v3040_v11  ;;  %v4007_v11 = vld [vmem:[#allocation3 + $0x1c8] sm:$0xff] }
 0x3d7   :  { %3043 = vmatpush1.bf16.msra.mxu0 %v3042_v54  ;;  %v1456_v56 = vsel %vm1452_vm11, %v1445_v40, %v1447_v3  ;;  %v1550_v57 = vsel %vm1546_vm13, %v1539_v39, %v3968_v46  ;;  %v4009_v54 = vld [vmem:[#allocation3 + $0x1c0] sm:$0xff] }
 0x3da   :  { %v1494_v8 = vpop.permute.xlu1 %1493  ;;  %v1588_v16 = vpop.permute.xlu0 %1587  ;;  %2891 = vmatmul.mubr.msk.f32.vlgmr.msra.gmra.mrb[6].mxu0 %vm487_vm9, %v3973_v55 }
 0x3db   :  { %v1503_v20 = vsel %vm1499_vm10, %v1492_v29, %v1494_v8  ;;  %v1597_v12 = vsel %vm1593_vm12, %v1586_v30, %v1588_v16  ;;  %2080 = vmatprep.mubr.f32.mxu0 %v3190_v6 }
 0x3dc   :  { %v3044_v14 = vpack.c.bf16 %v1503_v20, %v1456_v56  ;;  %v3048_v24 = vpack.c.bf16 %v1597_v12, %v1550_v57 }
 0x3de   :  { %v1645_v17 = vpop.permute.xlu1 %1644  ;;  %v1647_v49 = vpop.permute.xlu0 %1646  ;;  %3045 = vmatprep.subr.bf16.mxu1 %v3044_v14 }
 0x3df   :  { %v1655_v13 = vsel %vm78_vm1, %v1645_v17, %v1647_v49  ;;  %3047 = vmatpush1.bf16.msra.mxu1 %v3046_v19  ;;  %v1654_v45 = vsel %vm78_vm1, %v1643_v53, %v1645_v17 }
 0x3e0   :  { %3049 = vmatprep.subr.bf16.mxu1 %v3048_v24  ;;  %v3052_v40 = vpack.c.bf16 %v1655_v13, %v3856_v4  ;;  %v3054_v48 = vpack.c.bf16 %v1654_v45, %v3827_v41 }
 0x3e2   :  { %v3991_v26 = vpop.permute.xlu1 %1692  ;;  %v1449_v27 = vpop.permute.xlu0 %1448 }
 0x3e3   :  { %3051 = vmatpush1.bf16.msra.mxu1 %v3050_v23 }
 0x3e4   :  { %3053 = vmatprep.subr.bf16.mxu1 %v3052_v40 }
 0x3e6   :  { %v1740_v60 = vpop.permute.xlu1 %1739  ;;  %v1496_v29 = vpop.permute.xlu0 %1495 }
 0x3e7   :  { %3055 = vmatpush1.bf16.msra.mxu1 %v3054_v48  ;;  %v1504_v44 = vsel %vm1499_vm10, %v1494_v8, %v1496_v29 }
 0x3ea   :  { %v3995_v5 = vpop.permute.xlu1 %1785  ;;  %v1691_v38 = vpop.permute.xlu0 %1690 }
 0x3eb   :  { %v1701_v53 = vsel %vm1698_vm14, %v3947_v37, %v1691_v38  ;;  %v1702_v31 = vsel %vm1698_vm14, %v1691_v38, %v3991_v26  ;;  %v1457_v37 = vsel %vm1452_vm11, %v1447_v3, %v1449_v27  ;;  %v4035_v38 = vld [vmem:[#allocation3 + $0x1d8] sm:$0xff] }
 0x3ec   :  { %v3066_v30 = vpack.c.bf16 %v1504_v44, %v1457_v37 }
 0x3ee   :  { %v1738_v47 = vpop.permute.xlu0 %1737  ;;  %v1451_v52 = vpop.permute.xlu1 %1450 }
 0x3ef   :  { %v1747_v4 = vsel %vm172_vm3, %v1736_v42, %v1738_v47  ;;  %v1748_v33 = vsel %vm172_vm3, %v1738_v47, %v1740_v60  ;;  %v1458_v25 = vsel %vm1452_vm11, %v1449_v27, %v1451_v52  ;;  %v4037_v47 = vld [vmem:[#allocation3 + $0x1d0] sm:$0xff] }
 0x3f0   :  { %v3056_v39 = vpack.c.bf16 %v1748_v33, %v1702_v31  ;;  %v3058_v41 = vpack.c.bf16 %v1747_v4, %v1701_v53  ;;  %v2093_v4 = vld [vmem:[%s4281_s2] sm:$0x3f] }
 0x3f2   :  { %v1543_v58 = vpop.permute.xlu0 %1542  ;;  %v1498_v43 = vpop.permute.xlu1 %1497  ;;  %3057 = vmatprep.subr.bf16.mxu1 %v3056_v39  ;;  %v2102_v39 = vrot.slane %v2093_v4, %v1388_v32 }
 0x3f3   :  { %v1505_v59 = vsel %vm1499_vm10, %v1496_v29, %v1498_v43  ;;  %3059 = vmatpush1.bf16.msra.mxu1 %v3058_v41  ;;  %v1551_v14 = vsel %vm1546_vm13, %v3968_v46, %v1543_v58 }
 0x3f4   :  { %v3064_v34 = vpack.c.bf16 %v1505_v59, %v1458_v25 }
 0x3f6   :  { %v1590_v51 = vpop.permute.xlu0 %1589  ;;  %v1545_v42 = vpop.permute.xlu1 %1544  ;;  %3065 = vmatprep.subr.bf16.mxu0 %v3064_v34 }
 0x3f7   :  { %3067 = vmatpush1.bf16.msra.mxu0 %v3066_v30  ;;  %v1598_v15 = vsel %vm1593_vm12, %v1588_v16, %v1590_v51  ;;  %v1552_v20 = vsel %vm1546_vm13, %v1543_v58, %v1545_v42  ;;  %v2118_v42 = vrot.slane %v2093_v4, %v1404_v36 }
 0x3f8   :  { %v3070_v22 = vpack.c.bf16 %v1598_v15, %v1551_v14 }
 0x3fa   :  { %v1784_v8 = vpop.permute.xlu0 %1783  ;;  %v1592_v56 = vpop.permute.xlu1 %1591 }
 0x3fb   :  { %v1793_v12 = vsel %vm219_vm4, %v3960_v1, %v1784_v8  ;;  %v1794_v3 = vsel %vm219_vm4, %v1784_v8, %v3995_v5  ;;  %v1599_v18 = vsel %vm1593_vm12, %v1590_v51, %v1592_v56 }
 0x3fc   :  { %v3060_v57 = vpack.c.bf16 %v4007_v11, %v1794_v3  ;;  %v3068_v19 = vpack.c.bf16 %v1599_v18, %v1552_v20  ;;  %v3062_v16 = vpack.c.bf16 %v4009_v54, %v1793_v12 }
 0x3fe   :  { %v1649_v17 = vpop.permute.xlu0 %1648  ;;  %v1697_v24 = vpop.permute.xlu1 %1696  ;;  %3061 = vmatprep.subr.bf16.mxu1 %v3060_v57  ;;  %3069 = vmatprep.subr.bf16.mxu0 %v3068_v19 }
 0x3ff   :  { %v1656_v1 = vsel %vm78_vm1, %v1647_v49, %v1649_v17  ;;  %v1657_v13 = vsel %vm78_vm1, %v1649_v17, %v3924_v0  ;;  %3063 = vmatpush1.bf16.msra.mxu1 %v3062_v16  ;;  %3071 = vmatpush1.bf16.msra.mxu0 %v3070_v22 }
 0x400   :  { %v3072_v28 = vpack.c.bf16 %v1657_v13, %v3858_v61  ;;  %v3074_v46 = vpack.c.bf16 %v1656_v1, %v3866_v2 }
 0x402   :  { %v1695_v23 = vpop.permute.xlu0 %1694  ;;  %v1744_v45 = vpop.permute.xlu1 %1743  ;;  %2892 = vmatmul.mubr.msk.f32.vlgmr.msra.gmra.mrb[6].mxu1 %vm487_vm9, %v3973_v55  ;;  %3073 = vmatprep.subr.bf16.mxu0 %v3072_v28 }
 0x403   :  { %3075 = vmatpush1.bf16.msra.mxu0 %v3074_v46  ;;  %2646 = vmatprep.mubr.f32.mxu1 %v3190_v6  ;;  %v1703_v49 = vsel %vm1698_vm14, %v3991_v26, %v1695_v23  ;;  %v1704_v0 = vsel %vm1698_vm14, %v1695_v23, %v1697_v24 }
 0x406   :  { %v1742_v27 = vpop.permute.xlu0 %1741  ;;  %v1790_v2 = vpop.permute.xlu1 %1789 }
 0x407   :  { %v1749_v40 = vsel %vm172_vm3, %v1740_v60, %v1742_v27  ;;  %v1750_v61 = vsel %vm172_vm3, %v1742_v27, %v1744_v45 }
 0x408   :  { %v3076_v48 = vpack.c.bf16 %v1750_v61, %v1704_v0  ;;  %v3078_v29 = vpack.c.bf16 %v1749_v40, %v1703_v49 }
 0x40a   :  { %v1788_v52 = vpop.permute.xlu0 %1787  ;;  %3077 = vmatprep.subr.bf16.mxu0 %v3076_v48  ;;  %v2198_v36 = vpop.permute.xlu1 %2197 }
 0x40b   :  { %v1795_v53 = vsel %vm219_vm4, %v3995_v5, %v1788_v52  ;;  %v1796_v26 = vsel %vm219_vm4, %v1788_v52, %v1790_v2  ;;  %3079 = vmatpush1.bf16.msra.mxu0 %v3078_v29  ;;  %v2098_v5 = vrot.slane %v2093_v4, %v1384_v9  ;;  %v2106_v9 = vrot.slane %v2093_v4, %v1392_v35 }
 0x40c   :  { %v3080_v31 = vpack.c.bf16 %v4035_v38, %v1796_v26  ;;  %v3082_v60 = vpack.c.bf16 %v4037_v47, %v1795_v53  ;;  %v2114_v35 = vrot.slane %v2093_v4, %v1400_v50 }
 0x40e   :  { %3081 = vmatprep.subr.bf16.mxu0 %v3080_v31  ;;  %v2290_v50 = vpop.permute.xlu1 %2289  ;;  %v2152_v3 = vpop.permute.xlu0 %2151 }
 0x40f   :  { %3083 = vmatpush1.bf16.msra.mxu0 %v3082_v60 }
 0x412   :  { %2893 = vmatmul.mubr.msk.f32.vlgmr.msra.gmra.mrb[8].mxu0 %vm487_vm9, %v3973_v55  ;;  %v2110_v55 = vrot.slane %v2093_v4, %v1396_v62  ;;  %v4168_v18 = vpop.permute.xlu1 %2359  ;;  %v2244_v14 = vpop.permute.xlu0 %2243 }
 0x413   :  { %2717 = vmatprep.mubr.f32.mxu0 %v3190_v6 }
 0x416   :  { %v4174_v57 = vpop.permute.xlu1 %2405 }
 0x4ad   :  { %v1940_v33 = vpop.f32.mrb[6].mxu0 }
 0x4ae   :  { %v2087_v41 = vmax.f32 %v1940_v33, 0.0  ;;  %v1942_v44 = vpop.f32.mrb[7].mxu0 }
 0x4af   :  { %v2088_v58 = vmax.f32 %v1942_v44, 0.0 }
 0x4b0   :  { %v4054_v43 = vmul.f32 %v2098_v5, %v2087_v41 }
 0x4b1   :  { %v4056_v25 = vmul.f32 %v2102_v39, %v2088_v58 }
 0x4b2   :  { %2153 = vrot.lane.b32.xlu0 %v4054_v43, %s3196_s14  ;;  %2393 = vrot.lane.b32.xlu1 %v4054_v43, %s3198_s21 }
 0x4b6   :  { %2199 = vrot.lane.b32.xlu0 %v4054_v43, %s3194_s12  ;;  %2485 = vrot.lane.b32.xlu1 %v4054_v43, %s3187_s24 }
 0x4ba   :  { %2245 = vrot.lane.b32.xlu0 %v4054_v43, %s3197_s17  ;;  %2155 = vrot.lane.b32.xlu1 %v4056_v25, %s3196_s14 }
 0x4be   :  { %2291 = vrot.lane.b32.xlu0 %v4054_v43, %s3195_s13  ;;  %2201 = vrot.lane.b32.xlu1 %v4056_v25, %s3194_s12 }
 0x4c2   :  { %2347 = vrot.lane.b32.xlu0 %v4054_v43, %s3184_s19  ;;  %2247 = vrot.lane.b32.xlu1 %v4056_v25, %s3197_s17 }
 0x4c6   :  { %2439 = vrot.lane.b32.xlu0 %v4054_v43, %s3186_s23  ;;  %2293 = vrot.lane.b32.xlu1 %v4056_v25, %s3195_s13 }
 0x4ca   :  { %2349 = vrot.lane.b32.xlu0 %v4056_v25, %s3184_s19  ;;  %2395 = vrot.lane.b32.xlu1 %v4056_v25, %s3198_s21 }
 0x4ce   :  { %2441 = vrot.lane.b32.xlu1 %v4056_v25, %s3186_s23 }
 0x4d2   :  { %2487 = vrot.lane.b32.xlu1 %v4056_v25, %s3187_s24 }
 0x4d5   :  { %v2011_v32 = vpop.f32.mrb[6].mxu1 }
 0x4d6   :  { %v2089_v59 = vmax.f32 %v2011_v32, 0.0  ;;  %v2013_v37 = vpop.f32.mrb[7].mxu1 }
 0x4d7   :  { %v2090_v34 = vmax.f32 %v2013_v37, 0.0 }
 0x4d8   :  { %v4094_v30 = vmul.f32 %v2106_v9, %v2089_v59 }
 0x4d9   :  { %v4096_v51 = vmul.f32 %v2110_v55, %v2090_v34 }
 0x4da   :  { %2397 = vrot.lane.b32.xlu0 %v4094_v30, %s3198_s21  ;;  %2351 = vrot.lane.b32.xlu1 %v4094_v30, %s3184_s19 }
 0x4de   :  { %2443 = vrot.lane.b32.xlu0 %v4094_v30, %s3186_s23  ;;  %2159 = vrot.lane.b32.xlu1 %v4096_v51, %s3196_s14 }
 0x4e2   :  { %2489 = vrot.lane.b32.xlu0 %v4094_v30, %s3187_s24  ;;  %2205 = vrot.lane.b32.xlu1 %v4096_v51, %s3194_s12 }
 0x4e5   :  { %v2082_v62 = vpop.f32.mrb[8].mxu0 }
 0x4e6   :  { %2157 = vrot.lane.b32.xlu0 %v4094_v30, %s3196_s14  ;;  %2251 = vrot.lane.b32.xlu1 %v4096_v51, %s3197_s17  ;;  %v2091_v15 = vmax.f32 %v2082_v62, 0.0  ;;  %v2084_v8 = vpop.f32.mrb[9].mxu0 }
 0x4e7   :  { %v2092_v56 = vmax.f32 %v2084_v8, 0.0 }
 0x4e8   :  { %v4118_v20 = vmul.f32 %v2114_v35, %v2091_v15 }
 0x4e9   :  { %v4120_v12 = vmul.f32 %v2118_v42, %v2092_v56 }
 0x4ea   :  { %2203 = vrot.lane.b32.xlu0 %v4094_v30, %s3194_s12  ;;  %2297 = vrot.lane.b32.xlu1 %v4096_v51, %s3195_s13 }
 0x4ee   :  { %2249 = vrot.lane.b32.xlu0 %v4094_v30, %s3197_s17  ;;  %2355 = vrot.lane.b32.xlu1 %v4118_v20, %s3184_s19 }
 0x4f2   :  { %2295 = vrot.lane.b32.xlu0 %v4094_v30, %s3195_s13  ;;  %2401 = vrot.lane.b32.xlu1 %v4118_v20, %s3198_s21 }
 0x4f6   :  { %2353 = vrot.lane.b32.xlu0 %v4096_v51, %s3184_s19  ;;  %2447 = vrot.lane.b32.xlu1 %v4118_v20, %s3186_s23 }
 0x4fa   :  { %2399 = vrot.lane.b32.xlu0 %v4096_v51, %s3198_s21  ;;  %2163 = vrot.lane.b32.xlu1 %v4120_v12, %s3196_s14 }
 0x4fe   :  { %2445 = vrot.lane.b32.xlu0 %v4096_v51, %s3186_s23  ;;  %2209 = vrot.lane.b32.xlu1 %v4120_v12, %s3194_s12 }
 0x502   :  { %2161 = vrot.lane.b32.xlu0 %v4118_v20, %s3196_s14  ;;  %2255 = vrot.lane.b32.xlu1 %v4120_v12, %s3197_s17 }
 0x506   :  { %2207 = vrot.lane.b32.xlu0 %v4118_v20, %s3194_s12  ;;  %2301 = vrot.lane.b32.xlu1 %v4120_v12, %s3195_s13 }
 0x50a   :  { %2253 = vrot.lane.b32.xlu0 %v4118_v20, %s3197_s17  ;;  %2451 = vrot.lane.b32.xlu1 %v3190_v6, %s3186_s23 }
 0x50e   :  { %2299 = vrot.lane.b32.xlu0 %v4118_v20, %s3195_s13  ;;  %2493 = vrot.lane.b32.xlu1 %v4118_v20, %s3187_s24 }
 0x512   :  { %2491 = vrot.lane.b32.xlu0 %v4096_v51, %s3187_s24  ;;  %2497 = vrot.lane.b32.xlu1 %v3190_v6, %s3187_s24 }
 0x516   :  { %2357 = vrot.lane.b32.xlu0 %v4120_v12, %s3184_s19 }
 0x51a   :  { %2403 = vrot.lane.b32.xlu0 %v4120_v12, %s3198_s21 }
 0x51e   :  { %2449 = vrot.lane.b32.xlu0 %v4120_v12, %s3186_s23 }
 0x522   :  { %2495 = vrot.lane.b32.xlu0 %v4120_v12, %s3187_s24 }
 0x524   :  { %v2154_v19 = vpop.permute.xlu0 %2153  ;;  %v2394_v16 = vpop.permute.xlu1 %2393 }
 0x525   :  { %v2165_v22 = vsel %vm1452_vm11, %v2152_v3, %v2154_v19 }
 0x528   :  { %v2200_v17 = vpop.permute.xlu0 %2199  ;;  %v2486_v24 = vpop.permute.xlu1 %2485 }
 0x529   :  { %v2211_v1 = vsel %vm1499_vm10, %v2198_v36, %v2200_v17 }
 0x52a   :  { %v3086_v61 = vpack.c.bf16 %v2211_v1, %v2165_v22 }
 0x52c   :  { %v2246_v13 = vpop.permute.xlu0 %2245  ;;  %v2156_v28 = vpop.permute.xlu1 %2155 }
 0x52d   :  { %v2257_v46 = vsel %vm1546_vm13, %v2244_v14, %v2246_v13  ;;  %v2166_v23 = vsel %vm1452_vm11, %v2154_v19, %v2156_v28 }
 0x530   :  { %v2292_v45 = vpop.permute.xlu0 %2291  ;;  %v2202_v27 = vpop.permute.xlu1 %2201 }
 0x531   :  { %v2303_v49 = vsel %vm1593_vm12, %v2290_v50, %v2292_v45  ;;  %v2212_v0 = vsel %vm1499_vm10, %v2200_v17, %v2202_v27  ;;  %v4209_v17 = vld [vmem:[%s4279_s3 + $0x18] sm:$0xff] }
 0x532   :  { %v3084_v40 = vpack.c.bf16 %v2212_v0, %v2166_v23  ;;  %v3090_v60 = vpack.c.bf16 %v2303_v49, %v2257_v46 }
 0x534   :  { %v2348_v2 = vpop.permute.xlu0 %2347  ;;  %v2248_v48 = vpop.permute.xlu1 %2247  ;;  %3085 = vmatprep.subr.bf16.mxu1 %v3084_v40 }
 0x535   :  { %v2258_v29 = vsel %vm1546_vm13, %v2246_v13, %v2248_v48  ;;  %3087 = vmatpush1.bf16.msra.mxu1 %v3086_v61 }
 0x538   :  { %v2440_v52 = vpop.permute.xlu0 %2439  ;;  %v2294_v53 = vpop.permute.xlu1 %2293 }
 0x539   :  { %v2304_v26 = vsel %vm1593_vm12, %v2292_v45, %v2294_v53 }
 0x53a   :  { %v3088_v31 = vpack.c.bf16 %v2304_v26, %v2258_v29 }
 0x53c   :  { %v2350_v4 = vpop.permute.xlu0 %2349  ;;  %v2396_v5 = vpop.permute.xlu1 %2395  ;;  %3089 = vmatprep.subr.bf16.mxu1 %v3088_v31 }
 0x53d   :  { %v2361_v33 = vsel %vm78_vm1, %v2348_v2, %v2350_v4  ;;  %v2407_v39 = vsel %vm1698_vm14, %v2394_v16, %v2396_v5  ;;  %3091 = vmatpush1.bf16.msra.mxu1 %v3090_v60 }
 0x53e   :  { %v3094_v35 = vpack.c.bf16 %v2361_v33, %v4054_v43 }
 0x540   :  { %v2442_v41 = vpop.permute.xlu1 %2441 }
 0x541   :  { %v2453_v44 = vsel %vm172_vm3, %v2440_v52, %v2442_v41 }
 0x542   :  { %v3098_v56 = vpack.c.bf16 %v2453_v44, %v2407_v39 }
 0x544   :  { %v2488_v58 = vpop.permute.xlu1 %2487 }
 0x545   :  { %v2499_v9 = vsel %vm219_vm4, %v2486_v24, %v2488_v58 }
 0x546   :  { %v3102_v43 = vpack.c.bf16 %v3962_v10, %v2499_v9 }
 0x54c   :  { %v2398_v32 = vpop.permute.xlu0 %2397  ;;  %v2352_v55 = vpop.permute.xlu1 %2351 }
 0x54d   :  { %v2408_v59 = vsel %vm1698_vm14, %v2396_v5, %v2398_v32  ;;  %v2362_v37 = vsel %vm78_vm1, %v2350_v4, %v2352_v55 }
 0x54e   :  { %v3092_v34 = vpack.c.bf16 %v2362_v37, %v4056_v25 }
 0x550   :  { %v2444_v62 = vpop.permute.xlu0 %2443  ;;  %v4194_v42 = vpop.permute.xlu1 %2159  ;;  %3093 = vmatprep.subr.bf16.mxu1 %v3092_v34 }
 0x551   :  { %v2454_v15 = vsel %vm172_vm3, %v2442_v41, %v2444_v62  ;;  %3095 = vmatpush1.bf16.msra.mxu1 %v3094_v35 }
 0x552   :  { %v3096_v8 = vpack.c.bf16 %v2454_v15, %v2408_v59 }
 0x554   :  { %v4197_v36 = vpop.permute.xlu0 %2489  ;;  %v2206_v50 = vpop.permute.xlu1 %2205  ;;  %3097 = vmatprep.subr.bf16.mxu1 %v3096_v8 }
 0x555   :  { %v2500_v3 = vsel %vm219_vm4, %v2488_v58, %v4197_v36  ;;  %3099 = vmatpush1.bf16.msra.mxu1 %v3098_v56 }
 0x556   :  { %v3100_v25 = vpack.c.bf16 %v3957_v63, %v2500_v3 }
 0x558   :  { %v2158_v14 = vpop.permute.xlu0 %2157  ;;  %v2252_v19 = vpop.permute.xlu1 %2251  ;;  %3101 = vmatprep.subr.bf16.mxu1 %v3100_v25 }
 0x559   :  { %v2167_v16 = vsel %vm1452_vm11, %v2156_v28, %v2158_v14  ;;  %v2168_v22 = vsel %vm1452_vm11, %v2158_v14, %v4194_v42  ;;  %3103 = vmatpush1.bf16.msra.mxu1 %v3102_v43 }
 0x55c   :  { %v2204_v24 = vpop.permute.xlu0 %2203  ;;  %v2298_v1 = vpop.permute.xlu1 %2297  ;;  %2895 = vmatmul.mubr.msk.f32.vlgmr.msra.gmra.mrb[8].mxu1 %vm487_vm9, %v4209_v17 }
 0x55d   :  { %v2213_v63 = vsel %vm1499_vm10, %v2202_v27, %v2204_v24  ;;  %v2214_v10 = vsel %vm1499_vm10, %v2204_v24, %v2206_v50  ;;  %2788 = vmatprep.mubr.f32.mxu1 %v3190_v6 }
 0x55e   :  { %v3104_v13 = vpack.c.bf16 %v2214_v10, %v2168_v22  ;;  %v3106_v28 = vpack.c.bf16 %v2213_v63, %v2167_v16 }
 0x560   :  { %v2250_v46 = vpop.permute.xlu0 %2249  ;;  %v4216_v23 = vpop.permute.xlu1 %2355  ;;  %3105 = vmatprep.subr.bf16.mxu0 %v3104_v13 }
 0x561   :  { %v2259_v45 = vsel %vm1546_vm13, %v2248_v48, %v2250_v46  ;;  %v2260_v49 = vsel %vm1546_vm13, %v2250_v46, %v2252_v19  ;;  %3107 = vmatpush1.bf16.msra.mxu0 %v3106_v28 }
 0x564   :  { %v2296_v0 = vpop.permute.xlu0 %2295  ;;  %v4220_v40 = vpop.permute.xlu1 %2401 }
 0x565   :  { %v2305_v27 = vsel %vm1593_vm12, %v2294_v53, %v2296_v0  ;;  %v2306_v61 = vsel %vm1593_vm12, %v2296_v0, %v2298_v1 }
 0x566   :  { %v3108_v2 = vpack.c.bf16 %v2306_v61, %v2260_v49  ;;  %v3110_v6 = vpack.c.bf16 %v2305_v27, %v2259_v45 }
 0x568   :  { %v2354_v29 = vpop.permute.xlu0 %2353  ;;  %v4224_v52 = vpop.permute.xlu1 %2447  ;;  %3109 = vmatprep.subr.bf16.mxu0 %v3108_v2 }
 0x569   :  { %v2363_v26 = vsel %vm78_vm1, %v2352_v55, %v2354_v29  ;;  %v2364_v48 = vsel %vm78_vm1, %v2354_v29, %v4216_v23  ;;  %3111 = vmatpush1.bf16.msra.mxu0 %v3110_v6 }
 0x56a   :  { %v3112_v31 = vpack.c.bf16 %v2364_v48, %v4096_v51  ;;  %v3114_v60 = vpack.c.bf16 %v2363_v26, %v4094_v30 }
 0x56c   :  { %v2400_v4 = vpop.permute.xlu0 %2399  ;;  %v2164_v53 = vpop.permute.xlu1 %2163  ;;  %3113 = vmatprep.subr.bf16.mxu0 %v3112_v31 }
 0x56d   :  { %v2409_v5 = vsel %vm1698_vm14, %v2398_v32, %v2400_v4  ;;  %v2410_v33 = vsel %vm1698_vm14, %v2400_v4, %v4220_v40  ;;  %3115 = vmatpush1.bf16.msra.mxu0 %v3114_v60 }
 0x570   :  { %v2446_v39 = vpop.permute.xlu0 %2445  ;;  %v2210_v41 = vpop.permute.xlu1 %2209 }
 0x571   :  { %v2455_v44 = vsel %vm172_vm3, %v2444_v62, %v2446_v39  ;;  %v2456_v58 = vsel %vm172_vm3, %v2446_v39, %v4224_v52 }
 0x572   :  { %v3116_v9 = vpack.c.bf16 %v2456_v58, %v2410_v33  ;;  %v3118_v51 = vpack.c.bf16 %v2455_v44, %v2409_v5 }
 0x574   :  { %v2162_v55 = vpop.permute.xlu0 %2161  ;;  %v2256_v30 = vpop.permute.xlu1 %2255  ;;  %3117 = vmatprep.subr.bf16.mxu0 %v3116_v9 }
 0x575   :  { %v2169_v59 = vsel %vm1452_vm11, %v4194_v42, %v2162_v55  ;;  %v2170_v32 = vsel %vm1452_vm11, %v2162_v55, %v2164_v53  ;;  %3119 = vmatpush1.bf16.msra.mxu0 %v3118_v51 }
 0x578   :  { %v2208_v37 = vpop.permute.xlu0 %2207  ;;  %v2302_v34 = vpop.permute.xlu1 %2301 }
 0x579   :  { %v2215_v35 = vsel %vm1499_vm10, %v2206_v50, %v2208_v37  ;;  %v2216_v62 = vsel %vm1499_vm10, %v2208_v37, %v2210_v41  ;;  %v3199_v37 = vmov 1966171168  }
 0x57a   :  { %v3124_v15 = vpack.c.bf16 %v2216_v62, %v2170_v32  ;;  %v3126_v8 = vpack.c.bf16 %v2215_v35, %v2169_v59 }
 0x57c   :  { %v2254_v56 = vpop.permute.xlu0 %2253  ;;  %3125 = vmatprep.subr.bf16.mxu1 %v3124_v15  ;;  %v2452_v43 = vpop.permute.xlu1 %2451 }
 0x57d   :  { %v2261_v3 = vsel %vm1546_vm13, %v2252_v19, %v2254_v56  ;;  %v2262_v25 = vsel %vm1546_vm13, %v2254_v56, %v2256_v30  ;;  %3127 = vmatpush1.bf16.msra.mxu1 %v3126_v8 }
 0x580   :  { %v2300_v42 = vpop.permute.xlu0 %2299  ;;  %v2494_v50 = vpop.permute.xlu1 %2493 }
 0x581   :  { %v2307_v14 = vsel %vm1593_vm12, %v2298_v1, %v2300_v42  ;;  %v2308_v16 = vsel %vm1593_vm12, %v2300_v42, %v2302_v34  ;;  %v2841_v34 = vunpack.c.l.s4 %v3199_v37 }
 0x582   :  { %v3128_v22 = vpack.c.bf16 %v2308_v16, %v2262_v25  ;;  %v3130_v24 = vpack.c.bf16 %v2307_v14, %v2261_v3 }
 0x583   :  { %v2842_v62 = vunpack.c.0.s8 %v2841_v34 }
 0x584   :  { %v2492_v63 = vpop.permute.xlu0 %2491  ;;  %3129 = vmatprep.subr.bf16.mxu1 %v3128_v22  ;;  %v2498_v27 = vpop.permute.xlu1 %2497 }
 0x585   :  { %v2501_v10 = vsel %vm219_vm4, %v4197_v36, %v2492_v63  ;;  %v2502_v13 = vsel %vm219_vm4, %v2492_v63, %v2494_v50  ;;  %3131 = vmatpush1.bf16.msra.mxu1 %v3130_v24  ;;  %v2845_v8 = vsub.s32 %v2842_v62, %v3781_v21 }
 0x586   :  { %v3120_v19 = vpack.c.bf16 %v4007_v11, %v2502_v13  ;;  %v3122_v28 = vpack.c.bf16 %v4009_v54, %v2501_v10 }
 0x588   :  { %v2358_v46 = vpop.permute.xlu0 %2357  ;;  %3121 = vmatprep.subr.bf16.mxu0 %v3120_v19 }
 0x589   :  { %v2365_v1 = vsel %vm78_vm1, %v4216_v23, %v2358_v46  ;;  %v2366_v45 = vsel %vm78_vm1, %v2358_v46, %v4168_v18  ;;  %3123 = vmatpush1.bf16.msra.mxu0 %v3122_v28 }
 0x58a   :  { %v3132_v49 = vpack.c.bf16 %v2366_v45, %v4120_v12  ;;  %v3134_v36 = vpack.c.bf16 %v2365_v1, %v4118_v20 }
 0x58c   :  { %v2404_v0 = vpop.permute.xlu0 %2403  ;;  %2896 = vmatmul.mubr.msk.f32.vlgmr.msra.gmra.mrb[10].mxu0 %vm487_vm9, %v4209_v17  ;;  %3133 = vmatprep.subr.bf16.mxu1 %v3132_v49 }
 0x58d   :  { %v2411_v11 = vsel %vm1698_vm14, %v4220_v40, %v2404_v0  ;;  %v2412_v54 = vsel %vm1698_vm14, %v2404_v0, %v4174_v57  ;;  %3135 = vmatpush1.bf16.msra.mxu1 %v3134_v36 }
 0x590   :  { %v2450_v23 = vpop.permute.xlu0 %2449 }
 0x591   :  { %v2457_v18 = vsel %vm172_vm3, %v4224_v52, %v2450_v23  ;;  %v2458_v12 = vsel %vm172_vm3, %v2450_v23, %v2452_v43 }
 0x592   :  { %v3136_v20 = vpack.c.bf16 %v2458_v12, %v2412_v54  ;;  %v3138_v61 = vpack.c.bf16 %v2457_v18, %v2411_v11 }
 0x594   :  { %v2496_v2 = vpop.permute.xlu0 %2495  ;;  %3137 = vmatprep.subr.bf16.mxu1 %v3136_v20 }
 0x595   :  { %v2503_v6 = vsel %vm219_vm4, %v2494_v50, %v2496_v2  ;;  %v2504_v29 = vsel %vm219_vm4, %v2496_v2, %v2498_v27  ;;  %3139 = vmatpush1.bf16.msra.mxu1 %v3138_v61 }
 0x596   :  { %v3140_v40 = vpack.c.bf16 %v4035_v38, %v2504_v29  ;;  %v3142_v57 = vpack.c.bf16 %v4037_v47, %v2503_v6 }
 0x598   :  { %3141 = vmatprep.subr.bf16.mxu1 %v3140_v40 }
 0x599   :  { %3143 = vmatpush1.bf16.msra.mxu1 %v3142_v57 }
 0x59c   :  { %2897 = vmatmul.mubr.msk.f32.vlgmr.msra.gmra.mrb[10].mxu1 %vm487_vm9, %v4209_v17 }
 0x62f   :  { %v2648_v52 = vpop.f32.mrb[8].mxu1 }
 0x630   :  { %v2898_v26 = vmul.f32 -1.442695, %v2648_v52  ;;  %v2650_v48 = vpop.f32.mrb[9].mxu1 }
 0x631   :  { %v2899_v31 = vmul.f32 -1.442695, %v2650_v48 }
 0x632   :  { %3160 = vpow2.f32 %v2898_v26 }
 0x633   :  { %3162 = vpow2.f32 %v2899_v31 }
 0x63c   :  { %v3161_v60 = vpop.eup %3160 }
 0x63d   :  { %v3163_v4 = vpop.eup %3162  ;;  %v2813_v53 = vadd.f32 1.0, %v3161_v60 }
 0x63e   :  { %v2814_v5 = vadd.f32 1.0, %v3163_v4 }
 0x63f   :  { %3164 = vrcp.f32 %v2813_v53 }
 0x640   :  { %3166 = vrcp.f32 %v2814_v5 }
 0x649   :  { %v3165_v38 = vpop.eup %3164 }
 0x64a   :  { %v3167_v33 = vpop.eup %3166 }
 0x64b   :  { %v2837_v47 = vcombine.low %v3165_v38, %v3167_v33 }
 0x64d   :  { %v2846_v42 = vrot.slane %v2837_v47, %v2845_v8 }
 0x65f   :  { %v2719_v39 = vpop.f32.mrb[10].mxu0 }
 0x660   :  { %v2900_v41 = vmul.f32 -1.442695, %v2719_v39  ;;  %v2721_v44 = vpop.f32.mrb[11].mxu0 }
 0x661   :  { %v2901_v58 = vmul.f32 -1.442695, %v2721_v44 }
 0x662   :  { %3168 = vpow2.f32 %v2900_v41 }
 0x663   :  { %3170 = vpow2.f32 %v2901_v58 }
 0x66c   :  { %v3169_v17 = vpop.eup %3168 }
 0x66d   :  { %v3171_v9 = vpop.eup %3170  ;;  %v2815_v51 = vadd.f32 1.0, %v3169_v17 }
 0x66e   :  { %v2816_v55 = vadd.f32 1.0, %v3171_v9 }
 0x66f   :  { %3172 = vrcp.f32 %v2815_v51  ;;  %v2790_v30 = vpop.f32.mrb[10].mxu1 }
 0x670   :  { %3174 = vrcp.f32 %v2816_v55  ;;  %v2902_v59 = vmul.f32 -1.442695, %v2790_v30  ;;  %v2792_v32 = vpop.f32.mrb[11].mxu1 }
 0x671   :  { %v2903_v35 = vmul.f32 -1.442695, %v2792_v32 }
 0x672   :  { %3176 = vpow2.f32 %v2902_v59 }
 0x673   :  { %3178 = vpow2.f32 %v2903_v35 }
 0x679   :  { %v3173_v15 = vpop.eup %3172 }
 0x67a   :  { %v3175_v56 = vpop.eup %3174 }
 0x67b   :  { %v2838_v3 = vcombine.low %v3173_v15, %v3175_v56 }
 0x67c   :  { %v3177_v25 = vpop.eup %3176 }
 0x67d   :  { %v3179_v43 = vpop.eup %3178  ;;  %v2853_v14 = vrot.slane %v2838_v3, %v2845_v8  ;;  %v2817_v16 = vadd.f32 1.0, %v3177_v25 }
 0x67e   :  { %v2818_v22 = vadd.f32 1.0, %v3179_v43 }
 0x67f   :  { %v2861_v24 = vcombine.low %v2846_v42, %v2853_v14  ;;  %3180 = vrcp.f32 %v2817_v16 }
 0x680   :  { %3182 = vrcp.f32 %v2818_v22 }
 0x681   :  { %v2868_v19 = vrot.slane %v2861_v24, %v2845_v8 }
 0x689   :  { %v3181_v50 = vpop.eup %3180 }
 0x68a   :  { %v3183_v63 = vpop.eup %3182 }
 0x68b   :  { %v2839_v10 = vcombine.low %v3181_v50, %v3183_v63 }
 0x68d   :  { %v2860_v13 = vrot.slane %v2839_v10, %v2845_v8 }
 0x68f   :  { %v2875_v28 = vrot.slane %v2860_v13, %v2845_v8 }
 0x691   :  { %v2876_v46 = vcombine.low %v2868_v19, %v2875_v28 }
 0x693   :  { %2878 = vst.msk [vmem:[%s4282_s4] sm:$0x3f] %vm3291_vm0, %v2876_v46 }

</bundles_post_ra>
